<compile_context>
chip_gen: v5e
topology: v5e:2x2
jax: 0.10.0
libtpu: 0.0.40
codegen_flags: <defaults>
</compile_context>

<pallas_src>
import jax
import jax.numpy as jnp
import numpy as np
from jax import lax
from jax.experimental import pallas as pl
from jax.experimental.pallas import tpu as pltpu

# ----------------------- config (consistent with module __init__) -----------
VOXEL_SIZE = (0.4, 0.4, 4.0)                      # args['voxel_size']
LIDAR_RANGE = (-3.2, -3.2, -3.0, 3.2, 3.2, 1.0)   # args['lidar_range']
NUM_POINT_FEATURES = 4                            # (x, y, z, intensity)
NUM_FILTERS = 64                                  # pillar_vfe num_filters=[64]
GRID_NX, GRID_NY, GRID_NZ = 16, 16, 1             # scatter grid_size
NUM_BEV_FEATURES = NUM_FILTERS
BN_EPS = 1e-3
D_AUG = NUM_POINT_FEATURES + 6                    # use_absolute_xyz, no distance -> 10

N_PILLARS = 64
MAX_POINTS = 8
BATCH = 2


# ----------------------- fused Pallas kernel --------------------------------
def _pillar_bev_kernel(vf_ref, meta_ref, w_ref, bias_ref, out_ref):
    """One batch element: PillarVFE (augment + mask + Linear + foldedBN + ReLU
    + max over points) fused with PointPillarScatter (one-hot MXU matmul).

    vf_ref   : (1, P, Nb, 4)   raw point features, points-leading layout
    meta_ref : (1, Nb, 5)      [num_points, cx, cy, cz, local_cell_id] (f32)
    w_ref    : (10, C)         BN-folded, re-packed weight:
                                 rows 0:3  = W[0:3] + W[4:7] + W[7:10]  (xyz)
                                 row  3    = W[3]                       (intensity)
                                 rows 4:7  = W[4:7]    (cluster-offset part)
                                 rows 7:10 = W[7:10]   (center-offset part)
    bias_ref : (1, C)          folded BN bias
    out_ref  : (1, C, n_cells) BEV slab for batch b = program_id(0)
    """
    _, p, nb, _ = vf_ref.shape
    c = w_ref.shape[1]
    n_cells = out_ref.shape[2]

    vf = vf_ref[0]                                    # (P, Nb, 4)
    meta = meta_ref[0]                                # (Nb, 5)
    num = meta[:, 0:1]                                # (Nb, 1) num points (float)
    center = meta[:, 1:4]                             # (Nb, 3) pillar centers
    cell = meta[:, 4:5].astype(jnp.int32)             # (Nb, 1) local cell id

    w = w_ref[...]
    w_pts, w_b, w_c = w[0:4], w[4:7], w[7:10]

    # --- PillarVFE augmentation (fused, VPU) ---------------------------------
    xyz = vf[:, :, :3]                                # (P, Nb, 3)
    inv_num = 1.0 / jnp.maximum(num, 1.0)             # clamp_min(1) like PillarVFE
    mean_xyz = jnp.sum(xyz, axis=0) * inv_num         # (Nb, 3) leading-axis reduce
    pidx = lax.broadcasted_iota(jnp.int32, (p, nb, 1), 0).astype(jnp.float32)
    mask = (pidx < num[None]).astype(jnp.float32)     # (P, Nb, 1) valid-point mask

    # --- PFNLayer: folded masked_feat10 @ W (one Din=4 point matmul) ---------
    xm = jnp.dot((vf * mask).reshape(p * nb, 4), w_pts,
                 preferred_element_type=jnp.float32)                   # (P*Nb, C)
    corr = (jnp.dot(mean_xyz, w_b, preferred_element_type=jnp.float32)
            + jnp.dot(center, w_c, preferred_element_type=jnp.float32))  # (Nb, C)
    x = xm.reshape(p, nb, c) - mask * corr[None] + bias_ref[...]
    x = jnp.maximum(x, 0.0)
    pf = jnp.max(x, axis=0)                                            # (Nb, C)

    # --- PointPillarScatter as one-hot MXU matmul (lane-dense output) --------
    col = lax.broadcasted_iota(jnp.int32, (nb, n_cells), 1)
    onehot = (col == cell).astype(jnp.float32)                          # (Nb, n_cells)
    out_ref[0] = lax.dot_general(pf, onehot, (((0,), (0,)), ((), ())),
                                 preferred_element_type=jnp.float32)    # (C, n_cells)


def pillar_bev_forward(vf_t, meta, w_packed, bias, *, batch_size, n_cells):
    _, p, nb, fdim = vf_t.shape
    din, c = w_packed.shape
    return pl.pallas_call(
        _pillar_bev_kernel,
        out_shape=jax.ShapeDtypeStruct((batch_size, c, n_cells), jnp.float32),
        grid_spec=pltpu.PrefetchScalarGridSpec(
            num_scalar_prefetch=0,
            grid=(batch_size,),
            in_specs=[
                pl.BlockSpec((1, p, nb, fdim), lambda b: (b, 0, 0, 0)),
                pl.BlockSpec((1, nb, 5), lambda b: (b, 0, 0)),
                pl.BlockSpec((din, c), lambda b: (0, 0)),
                pl.BlockSpec((1, c), lambda b: (0, 0)),
            ],
            out_specs=pl.BlockSpec((1, c, n_cells), lambda b: (b, 0, 0)),
        ),
        compiler_params=pltpu.CompilerParams(
            dimension_semantics=("parallel",)),   # disjoint per-batch blocks; 2 TCs on v7x
    )(vf_t, meta, w_packed, bias)


# ----------------------- full forward (Pallas path) -------------------------
def point_pillar_forward(params, voxel_features, voxel_num_points, voxel_coords,
                         batch_size):
    n, p, fdim = voxel_features.shape
    assert n % batch_size == 0  # pillars are batch-sorted with equal counts
    nb = n // batch_size
    n_cells = GRID_NZ * GRID_NY * GRID_NX

    # Fold eval-mode BatchNorm into the Linear weight, then re-pack rows so the
    # kernel needs one Din=4 point matmul plus two per-pillar corrections.
    scale = params["bn_gamma"] / jnp.sqrt(params["bn_var"] + BN_EPS)
    bias = (params["bn_beta"] - params["bn_mean"] * scale)[None, :]      # (1, C)
    w_s = params["w"] * scale[None, :]                                   # (10, C)
    w_packed = jnp.concatenate(
        [w_s[0:3] + w_s[4:7] + w_s[7:10],   # xyz rows (raw + cluster + center uses)
         w_s[3:4],                          # intensity row
         w_s[4:7],                          # cluster-offset rows (mean correction)
         w_s[7:10]],                        # center-offset rows (center correction)
        axis=0)                                                          # (10, C)

    # Per-pillar meta: [num_points, cx, cy, cz, local_cell_id] (all exact in f32).
    vx, vy, vz = VOXEL_SIZE
    cx = voxel_coords[:, 3].astype(jnp.float32) * vx + (vx / 2.0 + LIDAR_RANGE[0])
    cy = voxel_coords[:, 2].astype(jnp.float32) * vy + (vy / 2.0 + LIDAR_RANGE[1])
    cz = voxel_coords[:, 1].astype(jnp.float32) * vz + (vz / 2.0 + LIDAR_RANGE[2])
    cell = (voxel_coords[:, 1] + voxel_coords[:, 2] * GRID_NX
            + voxel_coords[:, 3]).astype(jnp.float32)                   # z + y*nx + x
    meta = jnp.stack([voxel_num_points.astype(jnp.float32), cx, cy, cz, cell],
                     axis=-1).reshape(batch_size, nb, 5)

    # Points-leading per-batch layout (B, P, Nb, 4): leading-axis point reduces
    # in-kernel, and each grid step DMAs only its own batch's pillars.
    vf_t = (voxel_features.astype(jnp.float32)
            .reshape(batch_size, nb, p, fdim).transpose(0, 2, 1, 3))

    bev = pillar_bev_forward(vf_t, meta, w_packed, bias,
                             batch_size=batch_size, n_cells=n_cells)     # (B, C, HW)
    # Already channel-major: free reshape to PyTorch NCHW (B, C*nz, ny, nx).
    return bev.reshape(batch_size, NUM_BEV_FEATURES * GRID_NZ, GRID_NY, GRID_NX)


# ----------------------- pure-JAX reference for validation ------------------
def _build_pillar_features_ref(voxel_features, voxel_num_points, voxel_coords):
    vf = voxel_features.astype(jnp.float32)
    num = jnp.maximum(voxel_num_points.astype(jnp.float32), 1.0)
    vx, vy, vz = VOXEL_SIZE
    x_off = vx / 2.0 + LIDAR_RANGE[0]
    y_off = vy / 2.0 + LIDAR_RANGE[1]
    z_off = vz / 2.0 + LIDAR_RANGE[2]
    points_mean = vf[:, :, :3].sum(axis=1, keepdims=True) / num[:, None, None]
    f_cluster = vf[:, :, :3] - points_mean
    cx = voxel_coords[:, 3].astype(jnp.float32)[:, None] * vx + x_off
    cy = voxel_coords[:, 2].astype(jnp.float32)[:, None] * vy + y_off
    cz = voxel_coords[:, 1].astype(jnp.float32)[:, None] * vz + z_off
    f_center = jnp.stack(
        [vf[:, :, 0] - cx, vf[:, :, 1] - cy, vf[:, :, 2] - cz], axis=-1)
    features = jnp.concatenate([vf, f_cluster, f_center], axis=-1)   # (N,P,10)
    mask = (jnp.arange(MAX_POINTS)[None, :] < voxel_num_points[:, None])
    return features * mask[:, :, None].astype(jnp.float32)


def point_pillar_forward_ref(params, voxel_features, voxel_num_points,
                             voxel_coords, batch_size):
    features = _build_pillar_features_ref(voxel_features, voxel_num_points,
                                          voxel_coords)
    scale = params["bn_gamma"] / jnp.sqrt(params["bn_var"] + BN_EPS)
    bias = params["bn_beta"] - params["bn_mean"] * scale
    n, p, d = features.shape
    x = jnp.dot(features.reshape(n * p, d), params["w"],
                precision=lax.Precision.HIGHEST)
    x = jnp.maximum(x * scale[None, :] + bias[None, :], 0.0)
    pf = x.reshape(n, p, -1).max(axis=1)
    n_cells = GRID_NZ * GRID_NX * GRID_NY
    bev = jnp.zeros((batch_size, n_cells, NUM_BEV_FEATURES), jnp.float32)
    cell = voxel_coords[:, 1] + voxel_coords[:, 2] * GRID_NX + voxel_coords[:, 3]
    bev = bev.at[voxel_coords[:, 0], cell].set(pf)
    return bev.transpose(0, 2, 1).reshape(
        batch_size, NUM_BEV_FEATURES * GRID_NZ, GRID_NY, GRID_NX)


# ----------------------- main ------------------------------------------------
if __name__ == "__main__":
    key = jax.random.PRNGKey(0)
    k_np, k_cell, k_xy, k_z = jax.random.split(key, 4)

    # voxel_num_points in [1, MAX_POINTS]
    vnum = jax.random.randint(k_np, (N_PILLARS,), 1, MAX_POINTS + 1, dtype=jnp.int32)

    # coords (N, 4) = [batch, z, y, x]; batch-sorted, unique cells per batch
    per_batch = N_PILLARS // BATCH
    cells_total = GRID_NX * GRID_NY
    coord_chunks = []
    for b in range(BATCH):
        perm = jax.random.permutation(jax.random.fold_in(k_cell, b),
                                      cells_total)[:per_batch]
        yy = (perm // GRID_NX).astype(jnp.int32)
        xx = (perm % GRID_NX).astype(jnp.int32)
        coord_chunks.append(jnp.stack(
            [jnp.full((per_batch,), b, jnp.int32),
             jnp.zeros((per_batch,), jnp.int32), yy, xx], axis=1))
    coords = jnp.concatenate(coord_chunks, axis=0)

    # voxel_features (N, P, 4): points near their pillar center, zero padding rows
    cx = coords[:, 3].astype(jnp.float32) * VOXEL_SIZE[0] + VOXEL_SIZE[0] / 2 + LIDAR_RANGE[0]
    cy = coords[:, 2].astype(jnp.float32) * VOXEL_SIZE[1] + VOXEL_SIZE[1] / 2 + LIDAR_RANGE[1]
    xy_noise = (jax.random.uniform(k_xy, (N_PILLARS, MAX_POINTS, 2)) - 0.5) * VOXEL_SIZE[0]
    pz = jax.random.uniform(k_z, (N_PILLARS, MAX_POINTS, 1)) * 4.0 - 3.0
    inten = jax.random.uniform(jax.random.fold_in(k_z, 1), (N_PILLARS, MAX_POINTS, 1))
    px = cx[:, None, None] + xy_noise[:, :, :1]
    py = cy[:, None, None] + xy_noise[:, :, 1:2]
    vfeat = jnp.concatenate([px, py, pz, inten], axis=-1)
    pad = (jnp.arange(MAX_POINTS)[None, :] < vnum[:, None]).astype(jnp.float32)
    vfeat = vfeat * pad[:, :, None]

    # deterministic parameters (PFNLayer: Linear(10,64,bias=False) + BatchNorm1d(64))
    ch = jnp.arange(NUM_FILTERS, dtype=jnp.float32)
    params = {
        "w": jax.random.normal(jax.random.fold_in(key, 100),
                               (D_AUG, NUM_FILTERS), jnp.float32) * 0.1,
        "bn_gamma": 1.0 + 0.1 * jnp.cos(ch * 0.1),
        "bn_beta": 0.05 * jnp.sin(ch * 0.2),
        "bn_mean": 0.01 * ch / NUM_FILTERS,
        "bn_var": 1.0 + 0.1 * (ch % 5.0),
    }

    out = point_pillar_forward(params, vfeat, vnum, coords, BATCH)
    out = jax.block_until_ready(out)

    ref = jax.block_until_ready(
        point_pillar_forward_ref(params, vfeat, vnum, coords, BATCH))

    assert out.shape == (BATCH, NUM_BEV_FEATURES * GRID_NZ, GRID_NY, GRID_NX), out.shape
    np.testing.assert_allclose(np.asarray(out), np.asarray(ref),
                               rtol=1e-3, atol=1e-3)
    print("KERNEL_OK")
</pallas_src>

<mosaic_0001>
module attributes {stable_mosaic.version = 11 : i64} {
  func.func @_pillar_bev_kernel(%arg0: i32, %arg1: memref<1x8x32x4xf32, #tpu.memory_space<vmem>>, %arg2: memref<1x32x5xf32, #tpu.memory_space<vmem>>, %arg3: memref<10x64xf32, #tpu.memory_space<vmem>>, %arg4: memref<1x64xf32, #tpu.memory_space<vmem>>, %arg5: memref<1x64x256xf32, #tpu.memory_space<vmem>>) attributes {dimension_semantics = [#tpu.dimension_semantics<parallel>], iteration_bounds = array<i64: 2>, scalar_prefetch = 0 : i64, scratch_operands = 0 : i64, tpu.core_type = #tpu.core_type<tc>, window_params = [{transform_indices = @transform_0, window_bounds = array<i64: 1, 8, 32, 4>}, {transform_indices = @transform_1, window_bounds = array<i64: 1, 32, 5>}, {pipeline_mode = #tpu.pipeline_mode<synchronous>, transform_indices = @transform_2, window_bounds = array<i64: 10, 64>}, {pipeline_mode = #tpu.pipeline_mode<synchronous>, transform_indices = @transform_3, window_bounds = array<i64: 1, 64>}, {transform_indices = @transform_4, window_bounds = array<i64: 1, 64, 256>}]} {
    %c0 = arith.constant 0 : index
    %c0_0 = arith.constant 0 : index
    %c0_1 = arith.constant 0 : index
    %c0_2 = arith.constant 0 : index
    %0 = vector.load %arg1[%c0, %c0_0, %c0_1, %c0_2] : memref<1x8x32x4xf32, #tpu.memory_space<vmem>>, vector<1x8x32x4xf32>
    %1 = vector.shape_cast %0 : vector<1x8x32x4xf32> to vector<8x32x4xf32>
    %c0_3 = arith.constant 0 : index
    %c0_4 = arith.constant 0 : index
    %c0_5 = arith.constant 0 : index
    %2 = vector.load %arg2[%c0_3, %c0_4, %c0_5] : memref<1x32x5xf32, #tpu.memory_space<vmem>>, vector<1x32x5xf32>
    %3 = vector.shape_cast %2 : vector<1x32x5xf32> to vector<32x5xf32>
    %4 = vector.extract_strided_slice %3 {offsets = [0, 0], sizes = [32, 1], strides = [1, 1]} : vector<32x5xf32> to vector<32x1xf32>
    %5 = vector.extract_strided_slice %3 {offsets = [0, 1], sizes = [32, 3], strides = [1, 1]} : vector<32x5xf32> to vector<32x3xf32>
    %6 = vector.extract_strided_slice %3 {offsets = [0, 4], sizes = [32, 1], strides = [1, 1]} : vector<32x5xf32> to vector<32x1xf32>
    %7 = arith.fptosi %6 : vector<32x1xf32> to vector<32x1xi32>
    %c0_6 = arith.constant 0 : index
    %c0_7 = arith.constant 0 : index
    %8 = vector.load %arg3[%c0_6, %c0_7] : memref<10x64xf32, #tpu.memory_space<vmem>>, vector<10x64xf32>
    %9 = vector.extract_strided_slice %8 {offsets = [0, 0], sizes = [4, 64], strides = [1, 1]} : vector<10x64xf32> to vector<4x64xf32>
    %10 = vector.extract_strided_slice %8 {offsets = [4, 0], sizes = [3, 64], strides = [1, 1]} : vector<10x64xf32> to vector<3x64xf32>
    %11 = vector.extract_strided_slice %8 {offsets = [7, 0], sizes = [3, 64], strides = [1, 1]} : vector<10x64xf32> to vector<3x64xf32>
    %12 = vector.extract_strided_slice %1 {offsets = [0, 0, 0], sizes = [8, 32, 3], strides = [1, 1, 1]} : vector<8x32x4xf32> to vector<8x32x3xf32>
    %cst = arith.constant 1.000000e+00 : f32
    %13 = vector.broadcast %cst : f32 to vector<32x1xf32>
    %14 = arith.maximumf %4, %13 : vector<32x1xf32>
    %cst_8 = arith.constant 1.000000e+00 : f32
    %15 = vector.broadcast %cst_8 : f32 to vector<32x1xf32>
    %16 = arith.divf %15, %14 : vector<32x1xf32>
    %cst_9 = arith.constant dense<0.000000e+00> : vector<32x3xf32>
    %17 = vector.multi_reduction <add>, %12, %cst_9 [0] : vector<8x32x3xf32> to vector<32x3xf32>
    %18 = vector.broadcast %16 : vector<32x1xf32> to vector<32x3xf32>
    %19 = arith.mulf %17, %18 : vector<32x3xf32>
    %20 = tpu.iota {dimensions = array<i32: 0>} : vector<8x32x1xi32>
    %21 = arith.sitofp %20 : vector<8x32x1xi32> to vector<8x32x1xf32>
    %22 = vector.shape_cast %4 : vector<32x1xf32> to vector<1x32x1xf32>
    %23 = vector.broadcast %22 : vector<1x32x1xf32> to vector<8x32x1xf32>
    %24 = arith.cmpf olt, %21, %23 : vector<8x32x1xf32>
    %25 = arith.extui %24 : vector<8x32x1xi1> to vector<8x32x1xi32>
    %26 = arith.sitofp %25 : vector<8x32x1xi32> to vector<8x32x1xf32>
    %27 = vector.broadcast %26 : vector<8x32x1xf32> to vector<8x32x4xf32>
    %28 = arith.mulf %1, %27 : vector<8x32x4xf32>
    %29 = vector.shape_cast %28 : vector<8x32x4xf32> to vector<256x4xf32>
    %cst_10 = arith.constant dense<0.000000e+00> : vector<256x64xf32>
    %30 = tpu.matmul %29, %9, %cst_10 {dimension_numbers = #tpu.dot_dimension_numbers<[1], [0], [0], [1], [0, 0, 1, 1], [], []>} : vector<256x4xf32>, vector<4x64xf32>, vector<256x64xf32> -> vector<256x64xf32>
    %cst_11 = arith.constant dense<0.000000e+00> : vector<32x64xf32>
    %31 = tpu.matmul %19, %10, %cst_11 {dimension_numbers = #tpu.dot_dimension_numbers<[1], [0], [0], [1], [0, 0, 1, 1], [], []>} : vector<32x3xf32>, vector<3x64xf32>, vector<32x64xf32> -> vector<32x64xf32>
    %cst_12 = arith.constant dense<0.000000e+00> : vector<32x64xf32>
    %32 = tpu.matmul %5, %11, %cst_12 {dimension_numbers = #tpu.dot_dimension_numbers<[1], [0], [0], [1], [0, 0, 1, 1], [], []>} : vector<32x3xf32>, vector<3x64xf32>, vector<32x64xf32> -> vector<32x64xf32>
    %33 = arith.addf %31, %32 : vector<32x64xf32>
    %34 = vector.shape_cast %30 : vector<256x64xf32> to vector<8x32x64xf32>
    %35 = vector.shape_cast %33 : vector<32x64xf32> to vector<1x32x64xf32>
    %36 = vector.broadcast %26 : vector<8x32x1xf32> to vector<8x32x64xf32>
    %37 = vector.broadcast %35 : vector<1x32x64xf32> to vector<8x32x64xf32>
    %38 = arith.mulf %36, %37 : vector<8x32x64xf32>
    %39 = arith.subf %34, %38 : vector<8x32x64xf32>
    %c0_13 = arith.constant 0 : index
    %c0_14 = arith.constant 0 : index
    %40 = vector.load %arg4[%c0_13, %c0_14] : memref<1x64xf32, #tpu.memory_space<vmem>>, vector<1x64xf32>
    %41 = vector.shape_cast %40 : vector<1x64xf32> to vector<1x1x64xf32>
    %42 = vector.broadcast %41 : vector<1x1x64xf32> to vector<8x32x64xf32>
    %43 = arith.addf %39, %42 : vector<8x32x64xf32>
    %cst_15 = arith.constant 0.000000e+00 : f32
    %44 = vector.broadcast %cst_15 : f32 to vector<8x32x64xf32>
    %45 = arith.maximumf %43, %44 : vector<8x32x64xf32>
    %cst_16 = arith.constant dense<0xFF800000> : vector<32x64xf32>
    %46 = vector.multi_reduction <maximumf>, %45, %cst_16 [0] : vector<8x32x64xf32> to vector<32x64xf32>
    %47 = tpu.iota {dimensions = array<i32: 1>} : vector<32x256xi32>
    %48 = vector.broadcast %7 : vector<32x1xi32> to vector<32x256xi32>
    %49 = arith.cmpi eq, %47, %48 : vector<32x256xi32>
    %50 = arith.extui %49 : vector<32x256xi1> to vector<32x256xi32>
    %51 = arith.sitofp %50 : vector<32x256xi32> to vector<32x256xf32>
    %cst_17 = arith.constant dense<0.000000e+00> : vector<64x256xf32>
    %52 = tpu.matmul %46, %51, %cst_17 {dimension_numbers = #tpu.dot_dimension_numbers<[0], [0], [1], [1], [0, 1, 1, 1], [], []>} : vector<32x64xf32>, vector<32x256xf32>, vector<64x256xf32> -> vector<64x256xf32>
    %c0_18 = arith.constant 0 : index
    %c0_19 = arith.constant 0 : index
    %c0_20 = arith.constant 0 : index
    %53 = vector.load %arg5[%c0_18, %c0_19, %c0_20] : memref<1x64x256xf32, #tpu.memory_space<vmem>>, vector<1x64x256xf32>
    %54 = vector.shape_cast %53 : vector<1x64x256xf32> to vector<64x256xf32>
    %55 = vector.shape_cast %52 : vector<64x256xf32> to vector<1x64x256xf32>
    tpu.vector_store %arg5[%c0_18, %c0_19, %c0_20], %55 {strides = array<i32>} : memref<1x64x256xf32, #tpu.memory_space<vmem>>, vector<1x64x256xf32>,
    return
  }
  func.func @transform_0(%arg0: i32) -> (i32, i32, i32, i32) {
    %c0_i32 = arith.constant 0 : i32
    %c0_i32_0 = arith.constant 0 : i32
    %c0_i32_1 = arith.constant 0 : i32
    %c0_i32_2 = arith.constant 0 : i32
    return %arg0, %c0_i32, %c0_i32_0, %c0_i32_1 : i32, i32, i32, i32
  }
  func.func @transform_1(%arg0: i32) -> (i32, i32, i32) {
    %c0_i32 = arith.constant 0 : i32
    %c0_i32_0 = arith.constant 0 : i32
    %c0_i32_1 = arith.constant 0 : i32
    return %arg0, %c0_i32, %c0_i32_0 : i32, i32, i32
  }
  func.func @transform_2(%arg0: i32) -> (i32, i32) {
    %c0_i32 = arith.constant 0 : i32
    %c0_i32_0 = arith.constant 0 : i32
    %c0_i32_1 = arith.constant 0 : i32
    return %c0_i32, %c0_i32_0 : i32, i32
  }
  func.func @transform_3(%arg0: i32) -> (i32, i32) {
    %c0_i32 = arith.constant 0 : i32
    %c0_i32_0 = arith.constant 0 : i32
    %c0_i32_1 = arith.constant 0 : i32
    return %c0_i32, %c0_i32_0 : i32, i32
  }
  func.func @transform_4(%arg0: i32) -> (i32, i32, i32) {
    %c0_i32 = arith.constant 0 : i32
    %c0_i32_0 = arith.constant 0 : i32
    %c0_i32_1 = arith.constant 0 : i32
    return %arg0, %c0_i32, %c0_i32_0 : i32, i32, i32
  }
}

</mosaic_0001>

<bundles_post_ra>
// kernel: tpu_custom_call.1
= control target key start
LH: loop header
LB: loop body
LE: loop exit
PB: predicated region body
PF: predicated region fallthrough
CT: control target
= control target key end

     0   :  { %9 = vsyncpa [#allocation3], 0  ;;  %s2712_s0 = inlined_call_operand.vmem [shape: f32[2,8,32,4], index: 0, kind: input, shape index: {}]   ;;  %s2713_s1 = inlined_call_operand.vmem [shape: f32[2,32,5], index: 1, kind: input, shape index: {}]   ;;  %s2714_s2 = inlined_call_operand.vmem [shape: f32[10,64], index: 2, kind: input, shape index: {}]   ;;  %s2715_s3 = inlined_call_operand.vmem [shape: f32[1,64], index: 3, kind: input, shape index: {}]   ;;  %s2716_s4 = inlined_call_operand.hbm [shape: f32[2,64,256], index: 4, kind: output, shape index: {}]  }
   0x1   :  { %11 = vsyncpa [#allocation3 + $0x1], 0  ;;  %s1906_s15 = smov 0   ;;  %s1908_s16 = smov 0  }
   0x2   :  { %s1910_s17 = smov 0   ;;  %s1912_s18 = smov 0  }
   0x3 LB: > { %s1927_s19 = sadd.s32 4294967295, %s1872_s18   ;;  %s1495_s20 = sadd.s32 4294967294, %s1872_s18   ;;  %s1872_s18 = sphi %s1912_s18, %s2768_s18   ;;  %s1868_s17 = sphi %s1910_s17, %s2767_s17   ;;  %s1864_s16 = sphi %s1908_s16, %s2766_s16   ;;  %s1860_s15 = sphi %s1906_s15, %s2765_s15  }
   0x4   : > { %s1931_s21 = sadd.s32 1, %s1872_s18   ;;  %s118_s22 = sadd.s32 1, %s1868_s17 }
   0x5   : > { %s115_s23 = ssub.s32 %s1872_s18, %s1931_s21  ;;  %p128_p0 = scmp.ne.s32.totalorder %s1868_s17, %s1864_s16 }
   0x6   : > { %p116_p1 = scmp.eq.s32.totalorder %s115_s23, 0  ;;  %p129_p2 = scmp.eq.s32.totalorder %s1927_s19, 1 }
   0x7   : > { %p134_p3 = scmp.ne.s32.totalorder %s1864_s16, %s1860_s15  ;;  %p135_p4 = scmp.eq.s32.totalorder %s1495_s20, 1 }
   0x8   : > { %s1942_s24 = scalar_select %p116_p1, %s1868_s17, %s118_s22  }
   0x9   : > { %p1944_p5 = por %p129_p2, %p128_p0  ;;  %p1948_p6 = por %p135_p4, %p134_p3 }
   0xa   : > { %p1498_p7 = scmp.ge.s32.totalorder %s1872_s18, 1  ;;  %p175_p8 = scmp.lt.s32.totalorder %s1872_s18, 3 }
   0xc   : > { %p176_p9 = pnand %p1498_p7, %p175_p8 }
   0xd   : > { %p206_p10 = scmp.lt.s32.totalorder (!%p176_p9), %s1927_s19, 1  ;;  %s1876_s6 = smov (!%p176_p9), 127  }
   0xe   : > { %179 = sbr.rel (%p176_p9) target bundleno = 747 (0x2eb), region = 36  ;;  %s203_s23 = sand.u32 (!%p176_p9), 1, %s1864_s16  }
   0xf   : > { %s1650_s29 = sshll.u32 (!%p176_p9), %s1927_s19, 7  ;;  %s1406_s9 = scalar_lea.sflag (!%p176_p9), [#allocation3], %s203_s23 }
  0x10   : > { %s1830_s13 = scalar_lea.hbm (!%p176_p9), %s2716_s4, 256 }
  0x13   : > { %v1874_v0 = vmov 0   ;;  %s1956_s27 = scalar_select %p206_p10, %s1927_s19, 1  ;;  %v1875_v4 = vmov 0.0  }
  0x14   : > { %1731 = vset.pattern.permute.xlu1 %v1874_v0  ;;  %1720 = vset.pattern.permute.xlu0 %v1874_v0 }
  0x15   : > { %1742 = vset.pattern.permute.xlu2 %v1874_v0  ;;  %s1649_s28 = sshll.u32 %s1956_s27, 5  ;;  %s1648_s7 = sshll.u32 %s1956_s27, 8 }
  0x16   : > { %s215_s5 = scalar_lea.vmem %s2713_s1, %s1649_s28  ;;  %s2079_s10 = scalar_lea.vmem %s2712_s0, %s1648_s7 }
  0x17   : > { %v1962_v1 = vld [vmem:[%s215_s5 + $0x10] sm:$0xff]  ;;  %v1964_v2 = vld [vmem:[%s215_s5] sm:$0xff]  ;;  %v1966_v3 = vld [vmem:[%s215_s5 + $0x18] sm:$0xff]  ;;  %s1499_s27 = sshll.u32 %s203_s23, 7 }
  0x18   : > { %vm1506_vm0 = vcmp.gt.f32.partialorder %v1962_v1, 0.0  ;;  %vm1522_vm1 = vcmp.gt.f32.partialorder %v1962_v1, 4.0  ;;  %vm1504_vm2 = vcmp.gt.f32.partialorder %v1964_v2, 0.0  ;;  %vm1520_vm3 = vcmp.gt.f32.partialorder %v1964_v2, 4.0  ;;  %v1976_v9 = vld [vmem:[%s215_s5 + $0x8] sm:$0xff]  ;;  %v2123_v56 = vld [vmem:[%s2079_s10 + $0x18] sm:$0xff] }
  0x19   : > { %v1538_v5 = vsel %vm1506_vm0, 1.0, %v1875_v4  ;;  %v1554_v6 = vsel %vm1522_vm1, 1.0, %v1875_v4  ;;  %v1536_v7 = vsel %vm1504_vm2, 1.0, %v1875_v4  ;;  %v1552_v8 = vsel %vm1520_vm3, 1.0, %v1875_v4  ;;  %s2660_s28 = scalar_lea.vmem [#allocation2], %s1499_s27 }
  0x1a   : > { %v1732_v10 = vpack.i.bf16 %v1538_v5, %v1554_v6  ;;  %v1721_v11 = vpack.i.bf16 %v1536_v7, %v1552_v8  ;;  %vm1507_vm4 = vcmp.gt.f32.partialorder %v1966_v3, 0.0  ;;  %vm1523_vm5 = vcmp.gt.f32.partialorder %v1966_v3, 4.0  ;;  %s1418_s7 = sshll.u32 %s2660_s28, 4  ;;  %s1419_s7 = int_to_ptr.vmem [resolvable:$true] %s1418_s7 }
  0x1b   : > { %vm1508_vm6 = vcmp.gt.f32.partialorder %v1964_v2, 1.0  ;;  %vm1524_vm7 = vcmp.gt.f32.partialorder %v1964_v2, 5.0  ;;  %v1539_v12 = vsel %vm1507_vm4, 1.0, %v1875_v4  ;;  %vm1505_vm8 = vcmp.gt.f32.partialorder %v1976_v9, 0.0 }
  0x1c   : > { %1733 = vperm.xlu1 %1731, %v1732_v10   ;;  %1722 = vperm.xlu0 %1720, %v1721_v11   ;;  %v1540_v13 = vsel %vm1508_vm6, 1.0, %v1875_v4  ;;  %v1556_v14 = vsel %vm1524_vm7, 1.0, %v1875_v4  ;;  %v1555_v15 = vsel %vm1523_vm5, 1.0, %v1875_v4  ;;  %vm1521_vm9 = vcmp.gt.f32.partialorder %v1976_v9, 4.0 }
  0x1d   : > { %v1743_v16 = vpack.i.bf16 %v1540_v13, %v1556_v14  ;;  %v1537_v17 = vsel %vm1505_vm8, 1.0, %v1875_v4  ;;  %v1553_v18 = vsel %vm1521_vm9, 1.0, %v1875_v4  ;;  %vm1509_vm10 = vcmp.gt.f32.partialorder %v1976_v9, 1.0 }
  0x1e   : > { %vm1525_vm11 = vcmp.gt.f32.partialorder %v1976_v9, 5.0  ;;  %v1737_v19 = vpack.i.bf16 %v1539_v12, %v1555_v15  ;;  %v1726_v20 = vpack.i.bf16 %v1537_v17, %v1553_v18  ;;  %v1541_v21 = vsel %vm1509_vm10, 1.0, %v1875_v4 }
  0x1f   : > { %1744 = vperm.xlu2 %1742, %v1743_v16   ;;  %v1557_v22 = vsel %vm1525_vm11, 1.0, %v1875_v4  ;;  %vm1511_vm12 = vcmp.gt.f32.partialorder %v1966_v3, 1.0  ;;  %vm1527_vm13 = vcmp.gt.f32.partialorder %v1966_v3, 5.0  ;;  %vm1510_vm14 = vcmp.gt.f32.partialorder %v1962_v1, 1.0 }
  0x20   : > { %vm1526_vm15 = vcmp.gt.f32.partialorder %v1962_v1, 5.0  ;;  %v1748_v23 = vpack.i.bf16 %v1541_v21, %v1557_v22  ;;  %v1543_v24 = vsel %vm1511_vm12, 1.0, %v1875_v4  ;;  %v1559_v25 = vsel %vm1527_vm13, 1.0, %v1875_v4 }
  0x21   : > { %v1542_v26 = vsel %vm1510_vm14, 1.0, %v1875_v4  ;;  %v1558_v27 = vsel %vm1526_vm15, 1.0, %v1875_v4  ;;  %vm1518_vm0 = vcmp.gt.f32.partialorder %v1962_v1, 3.0  ;;  %vm1528_vm1 = vcmp.gt.f32.partialorder %v1964_v2, 6.0 }
  0x22   : > { %v259_v28 = vmax.f32 %v1976_v9, 1.0  ;;  %v258_v29 = vmax.f32 %v1964_v2, 1.0  ;;  %v1758_v30 = vpack.i.bf16 %v1543_v24, %v1559_v25  ;;  %v1753_v31 = vpack.i.bf16 %v1542_v26, %v1558_v27 }
  0x23   : > { %vm1513_vm2 = vcmp.gt.f32.partialorder %v1976_v9, 2.0  ;;  %vm1519_vm3 = vcmp.gt.f32.partialorder %v1966_v3, 3.0  ;;  %v1550_v32 = vsel %vm1518_vm0, 1.0, %v1875_v4  ;;  %v1560_v33 = vsel %vm1528_vm1, 1.0, %v1875_v4 }
  0x24   : > { %1738 = vperm.xlu1 %1731, %v1737_v19   ;;  %1727 = vperm.xlu0 %1720, %v1726_v20   ;;  %1802 = vrcp.f32 %v259_v28  ;;  %vm1512_vm4 = vcmp.gt.f32.partialorder %v1964_v2, 2.0  ;;  %vm1529_vm5 = vcmp.gt.f32.partialorder %v1976_v9, 6.0  ;;  %v2013_v34 = vmax.f32 %v1962_v1, 1.0 }
  0x25   : > { %1804 = vrcp.f32 %v258_v29  ;;  %v1545_v35 = vsel %vm1513_vm2, 1.0, %v1875_v4  ;;  %v1551_v36 = vsel %vm1519_vm3, 1.0, %v1875_v4  ;;  %v1763_v37 = vpack.i.bf16 %v1550_v32, %v1560_v33 }
  0x26   : > { %v2018_v38 = vmax.f32 %v1966_v3, 1.0  ;;  %v1544_v39 = vsel %vm1512_vm4, 1.0, %v1875_v4  ;;  %v1561_v40 = vsel %vm1529_vm5, 1.0, %v1875_v4  ;;  %1806 = vrcp.f32 %v2013_v34 }
  0x27   : > { %1749 = vperm.xlu2 %1742, %v1748_v23   ;;  %v1773_v43 = vpack.i.bf16 %v1545_v35, %v1551_v36  ;;  %vm1514_vm6 = vcmp.gt.f32.partialorder %v1962_v1, 2.0  ;;  %v1768_v45 = vpack.i.bf16 %v1561_v40, %v1544_v39  ;;  %vm282_vm7 = vweird.f32 %v259_v28  ;;  %v2082_v39 = vld [vmem:[%s2079_s10 + $0x20] sm:$0xff] }
  0x28   : > { %1808 = vrcp.f32 %v2018_v38  ;;  %vm1530_vm8 = vcmp.gt.f32.partialorder %v1962_v1, 6.0  ;;  %v288_v48 = vand.u32 2147483648, %v259_v28  ;;  %v273_v49 = vand.u32 2147483648, %v258_v29  ;;  %v2092_v40 = vld [vmem:[%s2079_s10] sm:$0xff] }
  0x29   : > { %vm267_vm10 = vweird.f32 %v258_v29  ;;  %v271_v51 = vand.u32 2147483647, %v258_v29  ;;  %v286_v54 = vand.u32 2147483647, %v259_v28  ;;  %v1546_v60 = vsel %vm1514_vm6, 1.0, %v1875_v4 }
  0x2a   : > { %v1803_v41 = vpop.eup %1802  ;;  %v1562_v61 = vsel %vm1530_vm8, 1.0, %v1875_v4  ;;  %v274_v62 = vor.u32 1.1754944e-38, %v273_v49  ;;  %v289_v63 = vor.u32 1.1754944e-38, %v288_v48  ;;  %vm1515_vm0 = vcmp.gt.f32.partialorder %v1966_v3, 2.0  ;;  %v2111_v48 = vld [vmem:[%s2079_s10 + $0x28] sm:$0xff] }
  0x2b   : > { %v1805_v42 = vpop.eup %1804  ;;  %v278_v44 = vmul.f32 %v1803_v41, %v259_v28  ;;  %vm283_vm9 = vweird.f32 %v1803_v41  ;;  %vm272_vm14 = vcmp.eq.f32.partialorder %v271_v51, 8.507059e+37  ;;  %vm287_vm15 = vcmp.eq.f32.partialorder %v286_v54, 8.507059e+37  ;;  %v217_v54 = vld [vmem:[%s2079_s10 + $0x8] sm:$0xff] }
  0x2c   : > { %1759 = vperm.xlu1 %1731, %v1758_v30   ;;  %1754 = vperm.xlu0 %1720, %v1753_v31   ;;  %v263_v46 = vmul.f32 %v1805_v42, %v258_v29  ;;  %vm268_vm11 = vweird.f32 %v1805_v42  ;;  %v1807_v52 = vpop.eup %1806  ;;  %vm2029_vm12 = vmor %vm282_vm7, %vm283_vm9  ;;  %vm1531_vm1 = vcmp.gt.f32.partialorder %v1966_v3, 6.0  ;;  %v1778_v11 = vpack.i.bf16 %v1546_v60, %v1562_v61  ;;  %v2131_v61 = vld [vmem:[%s2079_s10 + $0x38] sm:$0xff] }
  0x2d   : > { %v279_v47 = vsub.f32 1.0, %v278_v44  ;;  %v293_v58 = vmul.f32 %v1807_v52, %v2013_v34  ;;  %vm269_vm13 = vmor %vm267_vm10, %vm268_vm11  ;;  %vm297_vm2 = vweird.f32 %v2013_v34  ;;  %vm298_vm3 = vweird.f32 %v1807_v52 }
  0x2e   : > { %v264_v50 = vsub.f32 1.0, %v263_v46  ;;  %v2026_v55 = vpop.eup %1808  ;;  %v303_v14 = vand.u32 2147483648, %v2013_v34  ;;  %v1547_v15 = vsel %vm1515_vm0, 1.0, %v1875_v4  ;;  %v301_v17 = vand.u32 2147483647, %v2013_v34  ;;  %vm299_vm4 = vmor %vm297_vm2, %vm298_vm3  ;;  %v2105_v46 = vld [vmem:[%s2079_s10 + $0x40] sm:$0xff] }
  0x2f   : > { %1764 = vperm.xlu2 %1742, %v1763_v37   ;;  %v280_v53 = vmul.f32 %v1803_v41, %v279_v47  ;;  %v294_v5 = vsub.f32 1.0, %v293_v58  ;;  %v308_v7 = vmul.f32 %v2026_v55, %v2018_v38  ;;  %v1563_v18 = vsel %vm1531_vm1, 1.0, %v1875_v4  ;;  %v2108_v47 = vld [vmem:[%s2079_s10 + $0x60] sm:$0xff] }
  0x30   : > { %v265_v57 = vmul.f32 %v1805_v42, %v264_v50  ;;  %v304_v20 = vor.u32 1.1754944e-38, %v303_v14  ;;  %v1783_v21 = vpack.i.bf16 %v1547_v15, %v1563_v18  ;;  %vm302_vm5 = vcmp.eq.f32.partialorder %v301_v17, 8.507059e+37  ;;  %v232_v50 = vld [vmem:[%s2079_s10 + $0x80] sm:$0xff]  ;;  %v2153_v14 = vld [vmem:[%s2079_s10 + $0x30] sm:$0xff] }
  0x31   : > { %v281_v59 = vadd.f32 %v1803_v41, %v280_v53  ;;  %v295_v10 = vmul.f32 %v1807_v52, %v294_v5  ;;  %v309_v19 = vsub.f32 1.0, %v308_v7  ;;  %vm1516_vm6 = vcmp.gt.f32.partialorder %v1964_v2, 3.0  ;;  %v2141_v7 = vld [vmem:[%s2079_s10 + $0x48] sm:$0xff] }
  0x32   : > { %v266_v0 = vadd.f32 %v1805_v42, %v265_v57  ;;  %vm1532_vm7 = vcmp.gt.f32.partialorder %v1964_v2, 7.0  ;;  %vm312_vm8 = vweird.f32 %v2018_v38  ;;  %vm313_vm9 = vweird.f32 %v2026_v55 }
  0x33   : > { %v285_v6 = vsel %vm2029_vm12, %v1803_v41, %v281_v59  ;;  %v296_v16 = vadd.f32 %v1807_v52, %v295_v10  ;;  %v310_v23 = vmul.f32 %v2026_v55, %v309_v19  ;;  %v318_v25 = vand.u32 2147483648, %v2018_v38  ;;  %vm314_vm10 = vmor %vm312_vm8, %vm313_vm9  ;;  %v2146_v10 = vld [vmem:[%s2079_s10 + $0x68] sm:$0xff] }
  0x34   : > { %1774 = vperm.xlu1 %1731, %v1773_v43   ;;  %1769 = vperm.xlu0 %1720, %v1768_v45   ;;  %v270_v8 = vsel %vm269_vm13, %v1805_v42, %v266_v0  ;;  %v290_v13 = vsel %vm287_vm15, %v289_v63, %v285_v6  ;;  %v316_v27 = vand.u32 2147483647, %v2018_v38  ;;  %v1548_v28 = vsel %vm1516_vm6, 1.0, %v1875_v4  ;;  %v2138_v6 = vld [vmem:[%s2079_s10 + $0x58] sm:$0xff] }
  0x35   : > { %v275_v12 = vsel %vm272_vm14, %v274_v62, %v270_v8  ;;  %v300_v22 = vsel %vm299_vm4, %v1807_v52, %v296_v16  ;;  %v311_v26 = vadd.f32 %v2026_v55, %v310_v23  ;;  %v1564_v29 = vsel %vm1532_vm7, 1.0, %v1875_v4 }
  0x36   : > { %v305_v24 = vsel %vm302_vm5, %v304_v20, %v300_v22  ;;  %v319_v30 = vor.u32 1.1754944e-38, %v318_v25  ;;  %v1788_v31 = vpack.i.bf16 %v1548_v28, %v1564_v29  ;;  %vm317_vm11 = vcmp.eq.f32.partialorder %v316_v27, 8.507059e+37  ;;  %v231_v22 = vld [vmem:[%s2079_s10 + $0x78] sm:$0xff]  ;;  %v230_v27 = vld [vmem:[%s2079_s10 + $0x70] sm:$0xff] }
  0x37   : > { %385 = vperm.xlu2 %1742, %v275_v12   ;;  %v315_v32 = vsel %vm314_vm10, %v2026_v55, %v311_v26  ;;  %vm1517_vm12 = vcmp.gt.f32.partialorder %v1976_v9, 3.0  ;;  %vm1533_vm13 = vcmp.gt.f32.partialorder %v1976_v9, 7.0  ;;  %vm1534_vm14 = vcmp.gt.f32.partialorder %v1962_v1, 7.0  ;;  %v218_v12 = vld [vmem:[%s2079_s10 + $0x10] sm:$0xff] }
  0x38   : > { %v320_v33 = vsel %vm317_vm11, %v319_v30, %v315_v32  ;;  %v1549_v34 = vsel %vm1517_vm12, 1.0, %v1875_v4  ;;  %v1565_v35 = vsel %vm1533_vm13, 1.0, %v1875_v4  ;;  %v1566_v37 = vsel %vm1534_vm14, 1.0, %v1875_v4  ;;  %v2170_v30 = vld [vmem:[%s2079_s10 + $0x50] sm:$0xff] }
  0x39   : > { %v1793_v36 = vpack.i.bf16 %v1549_v34, %v1565_v35  ;;  %vm1535_vm15 = vcmp.gt.f32.partialorder %v1966_v3, 7.0  ;;  %vm322_vm0 = vcmask 23552   ;;  %vm800_vm1 = vcmask 1043456  }
  0x3a   : > { %v1567_v38 = vsel %vm1535_vm15, 1.0, %v1875_v4  ;;  %v2087_v4 = vld [vmem:[%s2714_s2] sm:$0xff]  ;;  %vm942_vm2 = vcmask 1042432   ;;  %v324_v42 = vsel %vm322_vm0, %v2082_v39, 0.0  ;;  %v323_v43 = vsel %vm322_vm0, %v2092_v40, 0.0 }
  0x3b   : > { %1568 = vmatpush.msk.msra.mxu0 %vm800_vm1, %v2087_v4  ;;  %1652 = vmatpush.msk.msra.mxu2 %vm800_vm1, %v2087_v4  ;;  %v974_v41 = vrot.slane %v2087_v4, 4  ;;  %v325_v44 = vadd.f32 %v324_v42, %v323_v43  ;;  %v326_v49 = vsel %vm322_vm0, %v2105_v46, 0.0  ;;  %v328_v52 = vsel %vm322_vm0, %v2108_v47, 0.0 }
  0x3c   : > { %390 = vperm.xlu1 %1731, %v290_v13   ;;  %1779 = vperm.xlu0 %1720, %v1778_v11   ;;  %v330_v53 = vsel %vm322_vm0, %v232_v50, 0.0  ;;  %v339_v55 = vsel %vm322_vm0, %v2111_v48, 0.0  ;;  %v338_v57 = vsel %vm322_vm0, %v217_v54, 0.0  ;;  %v368_v59 = vsel %vm322_vm0, %v2123_v56, 0.0  ;;  %v233_v13 = vld [vmem:[%s2079_s10 + $0x88] sm:$0xff] }
  0x3d   : > { %1651 = vmatpush.msk.msra.mxu1 %vm800_vm1, %v2087_v4  ;;  %1653 = vmatpush.msk.msra.mxu3 %vm800_vm1, %v2087_v4  ;;  %v327_v51 = vadd.f32 %v326_v49, %v325_v44  ;;  %v340_v62 = vadd.f32 %v339_v55, %v338_v57  ;;  %v369_v63 = vsel %vm322_vm0, %v2131_v61, 0.0  ;;  %v371_v8 = vsel %vm322_vm0, %v2138_v6, 0.0 }
  0x3e   : > { %1606 = vmatpush.msk.msrb.mxu2 %vm942_vm2, %v974_v41  ;;  %v370_v5 = vadd.f32 %v369_v63, %v368_v59  ;;  %v341_v11 = vsel %vm322_vm0, %v2141_v7, 0.0  ;;  %v343_v16 = vsel %vm322_vm0, %v2146_v10, 0.0  ;;  %v353_v17 = vsel %vm322_vm0, %v218_v12, 0.0 }
  0x3f   : > { %1784 = vperm.xlu2 %1742, %v1783_v21   ;;  %v329_v58 = vadd.f32 %v328_v52, %v327_v51  ;;  %v342_v15 = vadd.f32 %v341_v11, %v340_v62  ;;  %v345_v18 = vsel %vm322_vm0, %v233_v13, 0.0  ;;  %v354_v19 = vsel %vm322_vm0, %v2153_v14, 0.0  ;;  %v235_v52 = vld [vmem:[%s2079_s10 + $0x98] sm:$0xff] }
  0x40   : > { %v372_v20 = vadd.f32 %v371_v8, %v370_v5  ;;  %v355_v23 = vadd.f32 %v354_v19, %v353_v17  ;;  %v356_v32 = vsel %vm322_vm0, %v2170_v30, 0.0  ;;  %vm703_vm3 = vcmask 31744  }
  0x41   : > { %v2128_v60 = vadd.f32 %v330_v53, %v329_v58  ;;  %v344_v21 = vadd.f32 %v343_v16, %v342_v15  ;;  %v375_v53 = vsel %vm322_vm0, %v235_v52, 0.0  ;;  %vm930_vm4 = vcmask 1040384  }
  0x42   : > { %v357_v35 = vadd.f32 %v356_v32, %v355_v23  ;;  %vm1669_vm5 = vcmp.lt.s32.totalorder %v1966_v3, 0  ;;  %vm1664_vm6 = vcmp.lt.s32.totalorder %v1962_v1, 0  ;;  %vm1659_vm7 = vcmp.lt.s32.totalorder %v1976_v9, 0 }
  0x43   : > { %v2163_v25 = vadd.f32 %v345_v18, %v344_v21  ;;  %vm1654_vm8 = vcmp.lt.s32.totalorder %v1964_v2, 0  ;;  %vm1150_vm9 = vcmask 523264  }
  0x44   : > { %395 = vperm.xlu1 %1731, %v305_v24   ;;  %921 = vrot.lane.b32.xlu0 %v1964_v2, %s1876_s6  ;;  %v373_v24 = vsel %vm322_vm0, %v231_v22, 0.0 }
  0x45   : > { %v374_v28 = vadd.f32 %v373_v24, %v372_v20 }
  0x47   : > { %1789 = vperm.xlu2 %1742, %v1788_v31   ;;  %v358_v31 = vsel %vm322_vm0, %v230_v27, 0.0  ;;  %v2203_v62 = vadd.f32 %v375_v53, %v374_v28 }
  0x48   : > { %v359_v41 = vadd.f32 %v358_v31, %v357_v35  ;;  %v2249_v31 = vld [vmem:[%s2079_s10 + $0xd0] sm:$0xff] }
  0x4c   : > { %400 = vperm.xlu1 %1731, %v320_v33   ;;  %923 = vrot.lane.b32.xlu0 %v1976_v9, %s1876_s6  ;;  %v234_v33 = vld [vmem:[%s2079_s10 + $0x90] sm:$0xff] }
  0x4f   : > { %1794 = vperm.xlu2 %1742, %v1793_v36   ;;  %v360_v36 = vsel %vm322_vm0, %v234_v33, 0.0 }
  0x50   : > { %v2186_v44 = vadd.f32 %v360_v36, %v359_v41 }
  0x54   : > { %663 = vperm.xlu1 %1731, %v1566_v37   ;;  %925 = vrot.lane.b32.xlu0 %v1962_v1, %s1876_s6 }
  0x57   : > { %927 = vrot.lane.b32.xlu2 %v1966_v3, %s1876_s6  ;;  %s1417_s6 = scalar_lea.hbm %s2716_s4, %s1650_s29 }
  0x58   : > { %s1420_s8 = sshll.u32 %s1417_s6, 4  ;;  %s1421_s8 = int_to_ptr.hbm [resolvable:$true] %s1420_s8 }
  0x5c   : > { %668 = vperm.xlu0 %1720, %v1567_v38  }
  0x79   : > { %v2102_v45 = vpop.permute.xlu2 %1744 }
  0x7a   : > { %v1747_v24 = vunpack.i.h.bf16 %v2102_v45 }
  0x7c   : > { %v675_v32 = vmul.f32 %v1747_v24, %v2082_v39 }
  0x81   : > { %v2135_v0 = vpop.permute.xlu2 %1749 }
  0x82   : > { %v2737_v39 = vunpack.i.h.bf16 %v2135_v0 }
  0x89   : > { %v2165_v26 = vpop.permute.xlu2 %1764 }
  0x8a   : > { %v2726_v29 = vunpack.i.h.bf16 %v2165_v26 }
  0x8c   : > { %v685_v34 = vmul.f32 %v2726_v29, %v230_v27  ;;  %v1746_v27 = vunpack.i.l.bf16 %v2102_v45 }
  0x8e   : > { %v2179_v37 = vpop.permute.xlu1 %1733  ;;  %v2181_v38 = vpop.permute.xlu0 %1722  ;;  %1583 = vmatmul.msk.f32.vlgmr.msra.gmra.mxu1 %vm703_vm3, %v685_v34 }
  0x8f   : > { %v1725_v42 = vunpack.i.h.bf16 %v2181_v38  ;;  %v1724_v43 = vunpack.i.l.bf16 %v2181_v38  ;;  %v2728_v63 = vunpack.i.h.bf16 %v2179_v37  ;;  %v2723_v5 = vunpack.i.l.bf16 %v2179_v37 }
  0x91   : > { %v671_v49 = vmul.f32 %v1725_v42, %v2092_v40  ;;  %v687_v51 = vmul.f32 %v1724_v43, %v232_v50  ;;  %v673_v15 = vmul.f32 %v2728_v63, %v218_v12 }
  0x93   : > { %1569 = vmatmul.msk.f32.vlgmr.msra.gmra.mxu0 %vm703_vm3, %v671_v49  ;;  %1585 = vmatmul.msk.f32.vlgmr.msra.gmra.mxu2 %vm703_vm3, %v687_v51  ;;  %v2730_v49 = vunpack.i.l.bf16 %v2135_v0  ;;  %v2273_v51 = vld [vmem:[%s2079_s10 + $0xd8] sm:$0xff] }
  0x96   : > { %v2197_v55 = vpop.permute.xlu1 %1738  ;;  %v2199_v57 = vpop.permute.xlu0 %1727 }
  0x97   : > { %v2738_v58 = vunpack.i.h.bf16 %v2199_v57  ;;  %v2735_v59 = vunpack.i.l.bf16 %v2199_v57  ;;  %v2720_v16 = vunpack.i.h.bf16 %v2197_v55  ;;  %v2718_v17 = vunpack.i.l.bf16 %v2197_v55 }
  0x99   : > { %v672_v40 = vmul.f32 %v2738_v58, %v217_v54  ;;  %v688_v50 = vmul.f32 %v2735_v59, %v233_v13  ;;  %v689_v54 = vmul.f32 %v2723_v5, %v234_v33  ;;  %v2223_v13 = vpop.permute.xlu2 %385  ;;  %v674_v20 = vmul.f32 %v2720_v16, %v2123_v56  ;;  %v245_v16 = vld [vmem:[%s2079_s10 + $0xe8] sm:$0xff] }
  0x9a   : > { %v690_v23 = vmul.f32 %v2718_v17, %v235_v52  ;;  %v1766_v5 = vunpack.i.l.bf16 %v2165_v26 }
  0x9b   : > { %1570 = vmatmul.msk.f32.gmra.mxu0 %vm703_vm3, %v672_v40  ;;  %1586 = vmatmul.msk.f32.gmra.mxu2 %vm703_vm3, %v688_v50  ;;  %v2278_v40 = vld [vmem:[%s2079_s10 + $0xa8] sm:$0xff]  ;;  %v676_v50 = vmul.f32 %v2737_v39, %v2111_v48 }
  0x9c   : > { %v257_v48 = vld [vmem:[%s2714_s2 + $0x8] sm:$0x3] }
  0x9e   : > { %v2213_v8 = vpop.permute.xlu1 %1759  ;;  %v2215_v11 = vpop.permute.xlu0 %1754 }
  0xa1   : > { %v2244_v28 = vpop.permute.xlu2 %1784 }
  0xa2   : > { %v2717_v41 = vunpack.i.l.bf16 %v2244_v28 }
  0xa3   : > { %1571 = vmatmul.msk.f32.gmra.mxu0 %vm703_vm3, %v673_v15  ;;  %1587 = vmatmul.msk.f32.gmra.mxu2 %vm703_vm3, %v689_v54  ;;  %v692_v54 = vmul.f32 %v2730_v49, %v2278_v40  ;;  %v247_v49 = vld [vmem:[%s2079_s10 + $0xf8] sm:$0xff] }
  0xa4   : > { %v698_v15 = vmul.f32 %v2717_v41, %v2273_v51  ;;  %v2302_v41 = vld [vmem:[%s2079_s10 + $0xb0] sm:$0xff] }
  0xa6   : > { %v2227_v18 = vpop.permute.xlu1 %1774  ;;  %v2229_v19 = vpop.permute.xlu0 %1769 }
  0xa7   : > { %v2719_v12 = vunpack.i.l.bf16 %v2227_v18  ;;  %v2736_v29 = vunpack.i.h.bf16 %v2227_v18 }
  0xa9   : > { %v686_v21 = vmul.f32 %v2719_v12, %v231_v22  ;;  %v2252_v22 = vld [vmem:[%s2079_s10 + $0xa0] sm:$0xff]  ;;  %v2275_v52 = vpop.permute.xlu2 %1789  ;;  %v239_v12 = vld [vmem:[%s2079_s10 + $0xb8] sm:$0xff] }
  0xaa   : > { %v691_v34 = vmul.f32 %v1746_v27, %v2252_v22 }
  0xab   : > { %1572 = vmatmul.msk.f32.gmra.mxu0 %vm703_vm3, %v674_v20  ;;  %1584 = vmatmul.msk.f32.gmra.mxu1 %vm703_vm3, %v686_v21  ;;  %v931_v21 = vrot.slane %v2087_v4, 7 }
  0xac   : > { %1588 = vmatmul.msk.f32.gmra.mxu2 %vm703_vm3, %v690_v23  ;;  %v2727_v23 = vunpack.i.h.bf16 %v2215_v11 }
  0xae   : > { %v2246_v56 = vpop.permute.xlu0 %1779  ;;  %v2261_v35 = vpop.permute.xlu1 %390 }
  0xaf   : > { %v2721_v33 = vunpack.i.l.bf16 %v2246_v56 }
  0xb1   : > { %v697_v36 = vmul.f32 %v2721_v33, %v2249_v31  ;;  %v2315_v17 = vpop.permute.xlu2 %1794 }
  0xb3   : > { %1573 = vmatmul.msk.f32.gmra.mxu0 %vm703_vm3, %v675_v32  ;;  %1595 = vmatmul.msk.f32.vlgmr.msra.gmra.mxu3 %vm703_vm3, %v697_v36  ;;  %v1791_v32 = vunpack.i.l.bf16 %v2275_v52  ;;  %v2722_v36 = vunpack.i.l.bf16 %v2215_v11 }
  0xb4   : > { %1589 = vmatmul.msk.f32.gmra.mxu2 %vm703_vm3, %v691_v34  ;;  %v932_v34 = vrot.slane %v257_v48, 7 }
  0xb5   : > { %v693_v48 = vmul.f32 %v2722_v36, %v2302_v41  ;;  %v1771_v36 = vunpack.i.l.bf16 %v2229_v19 }
  0xb6   : > { %v922_v53 = vpop.permute.xlu0 %921  ;;  %v2289_v20 = vpop.permute.xlu1 %395 }
  0xbb   : > { %1574 = vmatmul.msk.f32.gmra.mxu0 %vm703_vm3, %v676_v50  ;;  %1596 = vmatmul.msk.f32.gmra.mxu3 %vm703_vm3, %v698_v15  ;;  %v933_v50 = vsel %vm930_vm4, %v931_v21, %v932_v34  ;;  %v244_v15 = vld [vmem:[%s2079_s10 + $0xe0] sm:$0xff] }
  0xbc   : > { %1590 = vmatmul.msk.f32.gmra.mxu2 %vm703_vm3, %v692_v54  ;;  %1601 = vmatpush.msk.msrb.mxu1 %vm942_vm2, %v933_v50  ;;  %v677_v54 = vmul.f32 %v2727_v23, %v2153_v14  ;;  %v699_v4 = vmul.f32 %v1791_v32, %v244_v15  ;;  %v2724_v14 = vunpack.i.h.bf16 %v2213_v8  ;;  %v2725_v50 = vunpack.i.l.bf16 %v2213_v8 }
  0xbd   : > { %1602 = vmatmul.msk.f32.vlgmr.msrb.gmra.mxu1 %vm322_vm0, %v922_v53  ;;  %v2729_v53 = vunpack.i.l.bf16 %v2315_v17  ;;  %v2731_v23 = vunpack.i.h.bf16 %v2229_v19  ;;  %vm1282_vm2 = vcmask 261120  }
  0xbe   : > { %v924_v21 = vpop.permute.xlu0 %923  ;;  %v2319_v34 = vpop.permute.xlu1 %400 }
  0xc3   : > { %1575 = vmatmul.msk.f32.gmra.mxu0 %vm703_vm3, %v677_v54  ;;  %1597 = vmatmul.msk.f32.gmra.mxu3 %vm703_vm3, %v699_v4  ;;  %v678_v54 = vmul.f32 %v2724_v14, %v2131_v61  ;;  %v700_v4 = vmul.f32 %v2729_v53, %v245_v16  ;;  %v246_v14 = vld [vmem:[%s2079_s10 + $0xf0] sm:$0xff]  ;;  %v241_v53 = vld [vmem:[%s2079_s10 + $0xc8] sm:$0xff] }
  0xc4   : > { %1591 = vmatmul.msk.f32.gmra.mxu2 %vm703_vm3, %v693_v48  ;;  %v694_v48 = vmul.f32 %v2725_v50, %v239_v12  ;;  %v679_v50 = vmul.f32 %v1771_v36, %v2105_v46 }
  0xc5   : > { %1603 = vmatmul.msk.f32.gmra.mxu1 %vm322_vm0, %v924_v21  ;;  %v240_v21 = vld [vmem:[%s2079_s10 + $0xc0] sm:$0xff]  ;;  %s1824_s10 = sshra.s32 %s1421_s8, 4  ;;  %s1825_s10 = int_to_ptr.hbm [resolvable:$true] %s1824_s10 }
  0xc6   : > { %v926_v33 = vpop.permute.xlu0 %925  ;;  %v2340_v61 = vpop.permute.xlu1 %663  ;;  %s1826_s19 = scalar_lea.hbm %s1825_s10, 128  ;;  %p1831_p0 = scmp.lt.s32.totalorder %s1825_s10, %s2716_s4 }
  0xc7   : > { %p1827_p11 = scmp.ne.s32.totalorder %s1825_s10, %s1826_s19  ;;  %p1832_p1 = scmp.lt.s32.totalorder %s1830_s13, %s1826_s19 }
  0xc9   : > { %p1828_p12 = pnand %p1827_p11, %p1944_p5  ;;  %p1833_p2 = por %p1832_p1, %p1831_p0 }
  0xcb   : > { %1576 = vmatmul.msk.f32.gmra.mxu0 %vm703_vm3, %v678_v54  ;;  %1598 = vmatmul.msk.f32.gmra.mxu3 %vm703_vm3, %v700_v4  ;;  %v701_v54 = vmul.f32 %v2340_v61, %v246_v14  ;;  %v695_v4 = vmul.f32 %v1766_v5, %v240_v21  ;;  %p1829_p13 = pneg %p1828_p12 }
  0xcc   : > { %1592 = vmatmul.msk.f32.gmra.mxu2 %vm703_vm3, %v694_v48  ;;  %v332_v48 = vsel %vm322_vm0, %v2252_v22, 0.0  ;;  %v680_v22 = vmul.f32 %v2736_v29, %v2141_v7  ;;  %v2733_v7 = vunpack.i.h.bf16 %v2246_v56 }
  0xcd   : > { %1604 = vmatmul.msk.f32.gmra.mxu1 %vm322_vm0, %v926_v33  ;;  %v333_v46 = vadd.f32 %v332_v48, %v2128_v60  ;;  %v334_v33 = vsel %vm322_vm0, %v240_v21, 0.0  ;;  %v347_v60 = vsel %vm322_vm0, %v2278_v40, 0.0  ;;  %v336_v48 = vsel %vm322_vm0, %v244_v15, 0.0  ;;  %v928_v21 = vpop.permute.xlu2 %927  ;;  %p1834_p3 = pnand %p1833_p2, %p1829_p13 }
  0xce   : > { %v2359_v63 = vpop.permute.xlu0 %668  ;;  %v681_v40 = vmul.f32 %v2733_v7, %v2170_v30  ;;  %v364_v30 = vsel %vm322_vm0, %v2249_v31, 0.0 }
  0xd3   : > { %1577 = vmatmul.msk.f32.gmra.mxu0 %vm703_vm3, %v679_v50  ;;  %1599 = vmatmul.msk.f32.gmra.mxu3 %vm703_vm3, %v701_v54  ;;  %v702_v50 = vmul.f32 %v2359_v63, %v247_v49  ;;  %v335_v54 = vadd.f32 %v334_v33, %v333_v46  ;;  %v348_v33 = vadd.f32 %v347_v60, %v2163_v25  ;;  %v2732_v25 = vunpack.i.h.bf16 %v2244_v28 }
  0xd4   : > { %1593 = vmatmul.msk.f32.gmra.mxu2 %vm703_vm3, %v695_v4  ;;  %v696_v4 = vmul.f32 %v2731_v23, %v241_v53  ;;  %v349_v23 = vsel %vm322_vm0, %v241_v53, 0.0  ;;  %v366_v60 = vsel %vm322_vm0, %v246_v14, 0.0  ;;  %v381_v14 = vsel %vm322_vm0, %v247_v49, 0.0 }
  0xd5   : > { %1605 = vmatmul.msk.f32.gmra.mxu1 %vm322_vm0, %v928_v21  ;;  %v337_v46 = vadd.f32 %v336_v48, %v335_v54  ;;  %v379_v21 = vsel %vm322_vm0, %v2273_v51, 0.0 }
  0xd7   : > { %v403_v15 = vmul.f32 %v2223_v13, %v337_v46  ;;  %v682_v13 = vmul.f32 %v2732_v25, %v2138_v6  ;;  %v2734_v46 = vunpack.i.h.bf16 %v2315_v17 }
  0xdb   : > { %1578 = vmatmul.msk.f32.gmra.mxu0 %vm703_vm3, %v680_v22  ;;  %1600 = vmatmul.msk.f32.gmra.mxu3 %vm703_vm3, %v702_v50  ;;  %v350_v22 = vadd.f32 %v349_v23, %v348_v33  ;;  %v362_v50 = vsel %vm322_vm0, %v2302_v41, 0.0 }
  0xdc   : > { %1594 = vmatmul.msk.f32.gmra.mxu2 %vm703_vm3, %v696_v4  ;;  %v351_v4 = vsel %vm322_vm0, %v245_v16, 0.0  ;;  %v363_v53 = vadd.f32 %v362_v50, %v2186_v44  ;;  %v377_v16 = vsel %vm322_vm0, %v239_v12, 0.0  ;;  %v1792_v44 = vunpack.i.h.bf16 %v2275_v52 }
  0xdd   : > { %v352_v54 = vadd.f32 %v351_v4, %v350_v22  ;;  %v378_v31 = vadd.f32 %v377_v16, %v2203_v62  ;;  %v684_v62 = vmul.f32 %v2734_v46, %v2146_v10  ;;  %v1671_v22 = vfloor.f32 %v1966_v3 }
  0xde   : > { %v365_v23 = vadd.f32 %v364_v30, %v363_v53  ;;  %v683_v6 = vmul.f32 %v1792_v44, %v2108_v47  ;;  %v1877_v50 = vmov 4   ;;  %v1666_v16 = vfloor.f32 %v1962_v1 }
  0xdf   : > { %v404_v41 = vmul.f32 %v2261_v35, %v352_v54  ;;  %v380_v35 = vadd.f32 %v379_v21, %v378_v31  ;;  %1798 = vset.pattern.permute.xlu1 %v1877_v50  ;;  %1799 = vset.pattern.permute.xlu2 %v1877_v50 }
  0xe0   : > { %v367_v48 = vadd.f32 %v366_v60, %v365_v23  ;;  %1800 = vset.pattern.permute.xlu0 %v1877_v50  ;;  %v1655_v50 = vceil.f32 %v1964_v2 }
  0xe1   : > { %v382_v33 = vadd.f32 %v381_v14, %v380_v35 }
  0xe2   : > { %v405_v12 = vmul.f32 %v2289_v20, %v367_v48 }
  0xe3   : > { %1579 = vmatmul.msk.f32.gmra.mxu0 %vm703_vm3, %v681_v40  ;;  %v406_v51 = vmul.f32 %v2319_v34, %v382_v33 }
  0xe4   : > { %1607 = vmatmul.msk.f32.vlgmr.msrb.gmra.mxu2 %vm322_vm0, %v403_v15  ;;  %v1670_v15 = vceil.f32 %v1966_v3  ;;  %v1665_v3 = vceil.f32 %v1962_v1 }
  0xe6   : > { %v1672_v34 = vsel %vm1669_vm5, %v1670_v15, %v1671_v22  ;;  %v1667_v60 = vsel %vm1664_vm6, %v1665_v3, %v1666_v16  ;;  %v1660_v15 = vceil.f32 %v1976_v9  ;;  %v1661_v22 = vfloor.f32 %v1976_v9 }
  0xe7   : > { %v1673_v4 = vcvt.f32.s32 %v1672_v34  ;;  %v1668_v48 = vcvt.f32.s32 %v1667_v60 }
  0xe8   : > { %v1662_v3 = vsel %vm1659_vm7, %v1660_v15, %v1661_v22 }
  0xe9   : > { %1224 = vperm.xlu1 %1798, %v1673_v4   ;;  %1221 = vperm.xlu2 %1799, %v1668_v48   ;;  %v1656_v4 = vfloor.f32 %v1964_v2  ;;  %v1663_v16 = vcvt.f32.s32 %v1662_v3 }
  0xeb   : > { %1580 = vmatmul.msk.f32.gmra.mxu0 %vm703_vm3, %v682_v13  ;;  %v1657_v60 = vsel %vm1654_vm8, %v1655_v50, %v1656_v4  ;;  %1218 = vperm.xlu0 %1800, %v1663_v16   ;;  %v2486_v50 = vld [vmem:[%s2715_s3] ss:$0 sm:$0xff] }
  0xec   : > { %1608 = vmatmul.msk.f32.gmra.mxu2 %vm322_vm0, %v404_v41  ;;  %v1658_v48 = vcvt.f32.s32 %v1657_v60 }
  0xf1   : > { %1215 = vperm.xlu1 %1798, %v1658_v48  }
  0xf3   : > { %1581 = vmatmul.msk.f32.gmra.mxu0 %vm703_vm3, %v683_v6 }
  0xf4   : > { %1609 = vmatmul.msk.f32.gmra.mxu2 %vm322_vm0, %v405_v12 }
  0xfb   : > { %1582 = vmatmul.msk.f32.gmra.mxu0 %vm703_vm3, %v684_v62 }
  0xfc   : > { %1610 = vmatmul.msk.f32.gmra.mxu2 %vm322_vm0, %v406_v51 }
 0x10b   : > { %v2455_v33 = vpop.f32.mrf.mxu1 }
 0x110   : > { %v2419_v47 = vpop.f32.mrf.mxu0 }
 0x116   : > { %v2421_v49 = vpop.f32.mrf.mxu2 }
 0x118   : > { %v2423_v20 = vpop.f32.mrf.mxu0 }
 0x11e   : > { %v2425_v40 = vpop.f32.mrf.mxu2 }
 0x120   : > { %v2430_v10 = vpop.f32.mrf.mxu0 }
 0x126   : > { %v2432_v54 = vpop.f32.mrf.mxu2 }
 0x128   : > { %v2434_v53 = vpop.f32.mrf.mxu0  ;;  %v2465_v34 = vpop.f32.mrf.mxu1 }
 0x12f   : > { %v2436_v30 = vpop.f32.mrf.mxu2 }
 0x130   : > { %v833_v13 = vpop.f32.mrf.mxu0 }
 0x136   : > { %v2457_v51 = vpop.f32.mrf.mxu3 }
 0x137   : > { %v2438_v41 = vpop.f32.mrf.mxu2 }
 0x138   : > { %v2440_v23 = vpop.f32.mrf.mxu0 }
 0x13a   : > { %v962_v9 = vpop.f32.mrf.mxu1 }
 0x13e   : > { %v2473_v46 = vpop.f32.mrf.mxu3 }
 0x13f   : > { %v2445_v31 = vpop.f32.mrf.mxu2 }
 0x140   : > { %v2447_v21 = vpop.f32.mrf.mxu0 }
 0x142   : > { %v965_v48 = vpop.f32.mrf.mxu1 }
 0x146   : > { %v905_v3 = vpop.f32.mrf.mxu3 }
 0x147   : > { %v2449_v6 = vpop.f32.mrf.mxu2 }
 0x148   : > { %v2451_v12 = vpop.f32.mrf.mxu0 }
 0x14f   : > { %v2453_v35 = vpop.f32.mrf.mxu2 }
 0x150   : > { %v845_v14 = vpop.f32.mrf.mxu0 }
 0x157   : > { %v893_v62 = vpop.f32.mrf.mxu2 }
 0x158   : > { %v2459_v1 = vpop.f32.mrf.mxu0 }
 0x15f   : > { %v2469_v25 = vpop.f32.mrf.mxu2 }
 0x160   : > { %v2471_v7 = vpop.f32.mrf.mxu0 }
 0x167   : > { %v1006_v59 = vpop.f32.mrf.mxu2 }
 0x168   : > { %v1007_v29 = vadd.f32 %v1006_v59, %v962_v9  ;;  %v2475_v39 = vpop.f32.mrf.mxu0 }
 0x16a   : > { %v1018_v2 = vmul.f32 %v1725_v42, %v1007_v29  ;;  %v1022_v15 = vmul.f32 %v1747_v24, %v1007_v29  ;;  %v1026_v22 = vmul.f32 %v1771_v36, %v1007_v29  ;;  %v1034_v4 = vmul.f32 %v1724_v43, %v1007_v29 }
 0x16b   : > { %v1038_v59 = vmul.f32 %v1746_v27, %v1007_v29  ;;  %v1042_v42 = vmul.f32 %v1766_v5, %v1007_v29  ;;  %v1046_v24 = vmul.f32 %v1791_v32, %v1007_v29 }
 0x16c   : > { %v1050_v36 = vsub.f32 %v2419_v47, %v1018_v2  ;;  %v1054_v16 = vsub.f32 %v833_v13, %v1022_v15  ;;  %v1058_v60 = vsub.f32 %v845_v14, %v1026_v22  ;;  %v1066_v9 = vsub.f32 %v2421_v49, %v1034_v4 }
 0x16d   : > { %v1070_v38 = vsub.f32 %v2438_v41, %v1038_v59  ;;  %v1074_v43 = vsub.f32 %v893_v62, %v1042_v42  ;;  %v1078_v58 = vsub.f32 %v905_v3, %v1046_v24  ;;  %v1030_v47 = vmul.f32 %v1792_v44, %v1007_v29 }
 0x16e   : > { %v1086_v45 = vadd.f32 %v2486_v50, %v1050_v36  ;;  %v1090_v27 = vadd.f32 %v2486_v50, %v1054_v16  ;;  %v1094_v5 = vadd.f32 %v2486_v50, %v1058_v60  ;;  %v1102_v13 = vadd.f32 %v2486_v50, %v1066_v9 }
 0x16f   : > { %v1009_v32 = vpop.f32.mrf.mxu2  ;;  %v1106_v14 = vadd.f32 %v2486_v50, %v1070_v38  ;;  %v1110_v49 = vadd.f32 %v2486_v50, %v1074_v43  ;;  %v1114_v42 = vadd.f32 %v2486_v50, %v1078_v58  ;;  %v2743_v44 = vunpack.i.h.bf16 %v2199_v57 }
 0x170   : > { %v2507_v41 = vadd.f32 %v1009_v32, %v965_v48  ;;  %v857_v62 = vpop.f32.mrf.mxu0  ;;  %v1118_v2 = vmax.f32 %v1086_v45, 0.0  ;;  %v1122_v15 = vmax.f32 %v1090_v27, 0.0  ;;  %v1126_v22 = vmax.f32 %v1094_v5, 0.0 }
 0x171   : > { %v1062_v4 = vsub.f32 %v857_v62, %v1030_v47  ;;  %v1134_v59 = vmax.f32 %v1102_v13, 0.0  ;;  %v1138_v24 = vmax.f32 %v1106_v14, 0.0  ;;  %v1142_v36 = vmax.f32 %v1110_v49, 0.0 }
 0x172   : > { %v1151_v52 = vsel %vm1150_vm9, %v1118_v2, -inf  ;;  %v1152_v29 = vsel %vm1150_vm9, %v1122_v15, -inf  ;;  %v1019_v3 = vmul.f32 %v2743_v44, %v2507_v41  ;;  %v1154_v48 = vsel %vm1150_vm9, %v1126_v22, -inf }
 0x173   : > { %v1098_v16 = vadd.f32 %v2486_v50, %v1062_v4  ;;  %v1153_v60 = vmax.f32 %v1151_v52, %v1152_v29  ;;  %v2744_v9 = vunpack.i.h.bf16 %v2135_v0  ;;  %v1158_v58 = vsel %vm1150_vm9, %v1134_v59, -inf }
 0x174   : > { %v2745_v43 = vunpack.i.h.bf16 %v2227_v18  ;;  %v2746_v27 = vunpack.i.l.bf16 %v2199_v57  ;;  %v2747_v32 = vunpack.i.l.bf16 %v2135_v0  ;;  %v2748_v14 = vunpack.i.h.bf16 %v2315_v17  ;;  %v968_v0 = vpop.f32.mrf.mxu1 }
 0x175   : > { %v1023_v38 = vmul.f32 %v2744_v9, %v2507_v41  ;;  %v1130_v13 = vmax.f32 %v1098_v16, 0.0  ;;  %v1051_v62 = vsub.f32 %v2423_v20, %v1019_v3  ;;  %v1155_v15 = vmax.f32 %v1153_v60, %v1154_v48 }
 0x176   : > { %v1027_v45 = vmul.f32 %v2745_v43, %v2507_v41  ;;  %v1035_v5 = vmul.f32 %v2746_v27, %v2507_v41  ;;  %v1039_v47 = vmul.f32 %v2747_v32, %v2507_v41  ;;  %v1031_v49 = vmul.f32 %v2748_v14, %v2507_v41 }
 0x177   : > { %v1055_v2 = vsub.f32 %v2440_v23, %v1023_v38  ;;  %v1156_v59 = vsel %vm1150_vm9, %v1130_v13, -inf  ;;  %v1012_v52 = vpop.f32.mrf.mxu2  ;;  %v1087_v29 = vadd.f32 %v2486_v50, %v1051_v62  ;;  %v1146_v16 = vmax.f32 %v1114_v42, 0.0 }
 0x178   : > { %v1059_v22 = vsub.f32 %v2459_v1, %v1027_v45  ;;  %v1067_v4 = vsub.f32 %v2425_v40, %v1035_v5  ;;  %v1071_v57 = vsub.f32 %v2445_v31, %v1039_v47  ;;  %v1157_v9 = vmax.f32 %v1155_v15, %v1156_v59  ;;  %v860_v20 = vpop.f32.mrf.mxu0  ;;  %v908_v5 = vpop.f32.mrf.mxu3 }
 0x179   : > { %v1091_v44 = vadd.f32 %v2486_v50, %v1055_v2  ;;  %v1160_v1 = vsel %vm1150_vm9, %v1138_v24, -inf  ;;  %v1063_v40 = vsub.f32 %v860_v20, %v1031_v49  ;;  %v1119_v60 = vmax.f32 %v1087_v29, 0.0 }
 0x17a   : > { %v1095_v23 = vadd.f32 %v2486_v50, %v1059_v22  ;;  %v1103_v3 = vadd.f32 %v2486_v50, %v1067_v4  ;;  %v1107_v31 = vadd.f32 %v2486_v50, %v1071_v57  ;;  %v1159_v38 = vmax.f32 %v1157_v9, %v1158_v58 }
 0x17b   : > { %v1123_v48 = vmax.f32 %v1091_v44, 0.0  ;;  %v1013_v43 = vadd.f32 %v1012_v52, %v968_v0  ;;  %v1099_v42 = vadd.f32 %v2486_v50, %v1063_v40  ;;  %v1166_v32 = vsel %vm1150_vm9, %v1119_v60, -inf }
 0x17c   : > { %v1127_v45 = vmax.f32 %v1095_v23, 0.0  ;;  %v1135_v27 = vmax.f32 %v1103_v3, 0.0  ;;  %v1162_v13 = vsel %vm1150_vm9, %v1142_v36, -inf  ;;  %v1139_v14 = vmax.f32 %v1107_v31, 0.0 }
 0x17d   : > { %v1167_v47 = vsel %vm1150_vm9, %v1123_v48, -inf  ;;  %v1161_v62 = vmax.f32 %v1159_v38, %v1160_v1  ;;  %v1131_v2 = vmax.f32 %v1099_v42, 0.0  ;;  %v1164_v15 = vsel %vm1150_vm9, %v1146_v16, -inf }
 0x17e   : > { %v1168_v24 = vmax.f32 %v1166_v32, %v1167_v47  ;;  %v1169_v49 = vsel %vm1150_vm9, %v1127_v45, -inf  ;;  %v1173_v58 = vsel %vm1150_vm9, %v1135_v27, -inf  ;;  %v2749_v22 = vunpack.i.h.bf16 %v2229_v19 }
 0x17f   : > { %v1163_v59 = vmax.f32 %v1161_v62, %v1162_v13  ;;  %v2750_v0 = vunpack.i.l.bf16 %v2315_v17  ;;  %v2751_v52 = vunpack.i.h.bf16 %v2179_v37  ;;  %v1171_v44 = vsel %vm1150_vm9, %v1131_v2, -inf }
 0x180   : > { %v1043_v4 = vmul.f32 %v2749_v22, %v2507_v41  ;;  %v1170_v57 = vmax.f32 %v1168_v24, %v1169_v49  ;;  %v2752_v20 = vunpack.i.h.bf16 %v2215_v11  ;;  %v2753_v23 = vunpack.i.h.bf16 %v2246_v56  ;;  %v911_v2 = vpop.f32.mrf.mxu3 }
 0x181   : > { %v1047_v36 = vmul.f32 %v2750_v0, %v2507_v41  ;;  %v1020_v29 = vmul.f32 %v2751_v52, %v1013_v43  ;;  %v1175_v1 = vsel %vm1150_vm9, %v1139_v14, -inf  ;;  %v1165_v40 = vmax.f32 %v1163_v59, %v1164_v15  ;;  %v1015_v15 = vpop.f32.mrf.mxu2 }
 0x182   : > { %v1075_v9 = vsub.f32 %v2469_v25, %v1043_v4  ;;  %v1024_v16 = vmul.f32 %v2752_v20, %v1013_v43  ;;  %v1028_v19 = vmul.f32 %v2753_v23, %v1013_v43  ;;  %v1172_v3 = vmax.f32 %v1170_v57, %v1171_v44 }
 0x183   : > { %v1079_v31 = vsub.f32 %v908_v5, %v1047_v36  ;;  %v2754_v41 = vunpack.i.h.bf16 %v2165_v26  ;;  %v2755_v48 = vunpack.i.l.bf16 %v2179_v37  ;;  %v2756_v25 = vunpack.i.l.bf16 %v2215_v11  ;;  %1250 = vxpose.xlu2.b32.start [1/4] (short) (narrow) %v1165_v40, 64 }
 0x184   : > { %v1111_v17 = vadd.f32 %v2486_v50, %v1075_v9  ;;  %v1174_v27 = vmax.f32 %v1172_v3, %v1173_v58  ;;  %v2757_v32 = vunpack.i.l.bf16 %v2246_v56  ;;  %v1048_v5 = vmul.f32 %v1013_v43, %v2340_v61 }
 0x185   : > { %v1032_v60 = vmul.f32 %v2754_v41, %v1013_v43  ;;  %v1036_v38 = vmul.f32 %v2755_v48, %v1013_v43  ;;  %v1040_v45 = vmul.f32 %v2756_v25, %v1013_v43  ;;  %v1115_v42 = vadd.f32 %v2486_v50, %v1079_v31 }
 0x186   : > { %v1044_v47 = vmul.f32 %v2757_v32, %v1013_v43  ;;  %v1143_v13 = vmax.f32 %v1111_v17, 0.0  ;;  %v1052_v14 = vsub.f32 %v2430_v10, %v1020_v29  ;;  %v1056_v26 = vsub.f32 %v2447_v21, %v1024_v16  ;;  %v971_v43 = vpop.f32.mrf.mxu1 }
 0x187   : > { %v1060_v37 = vsub.f32 %v2471_v7, %v1028_v19  ;;  %v1176_v24 = vmax.f32 %v1174_v27, %v1175_v1  ;;  %v1147_v49 = vmax.f32 %v1115_v42, 0.0  ;;  %v1064_v11 = vsub.f32 %v2455_v33, %v1032_v60 }
 0x188   : > { %v1068_v62 = vsub.f32 %v2432_v54, %v1036_v38  ;;  %v1177_v58 = vsel %vm1150_vm9, %v1143_v13, -inf  ;;  %v1072_v56 = vsub.f32 %v2449_v6, %v1040_v45  ;;  %v1076_v61 = vsub.f32 %v2457_v51, %v1044_v47 }
 0x189   : > { %v1178_v10 = vmax.f32 %v1176_v24, %v1177_v58  ;;  %v1080_v22 = vsub.f32 %v911_v2, %v1048_v5  ;;  %v1088_v21 = vadd.f32 %v2486_v50, %v1052_v14  ;;  %v1092_v7 = vadd.f32 %v2486_v50, %v1056_v26 }
 0x18a   : > { %v1179_v4 = vsel %vm1150_vm9, %v1147_v49, -inf  ;;  %v1096_v33 = vadd.f32 %v2486_v50, %v1060_v37  ;;  %v1100_v54 = vadd.f32 %v2486_v50, %v1064_v11  ;;  %v1104_v57 = vadd.f32 %v2486_v50, %v1068_v62 }
 0x18b   : > { %v1180_v59 = vmax.f32 %v1178_v10, %v1179_v4  ;;  %v1108_v6 = vadd.f32 %v2486_v50, %v1072_v56  ;;  %v1112_v51 = vadd.f32 %v2486_v50, %v1076_v61  ;;  %v1120_v0 = vmax.f32 %v1088_v21, 0.0 }
 0x18c   : > { %v1016_v36 = vadd.f32 %v1015_v15, %v971_v43  ;;  %v1124_v52 = vmax.f32 %v1092_v7, 0.0  ;;  %v1128_v29 = vmax.f32 %v1096_v33, 0.0  ;;  %v1132_v44 = vmax.f32 %v1100_v54, 0.0 }
 0x18d   : > { %1251 = vxpose.xlu2.b32.cont [2/4] (short) (narrow) %v1180_v59, 64  ;;  %v1181_v9 = vsel %vm1150_vm9, %v1120_v0, -inf  ;;  %v1116_v20 = vadd.f32 %v2486_v50, %v1080_v22  ;;  %v1136_v16 = vmax.f32 %v1104_v57, 0.0  ;;  %v1140_v19 = vmax.f32 %v1108_v6, 0.0 }
 0x18e   : > { %v1182_v23 = vsel %vm1150_vm9, %v1124_v52, -inf  ;;  %v1144_v3 = vmax.f32 %v1112_v51, 0.0  ;;  %v1184_v40 = vsel %vm1150_vm9, %v1128_v29, -inf  ;;  %v2758_v31 = vunpack.i.h.bf16 %v2197_v55 }
 0x18f   : > { %v1183_v1 = vmax.f32 %v1181_v9, %v1182_v23  ;;  %v2759_v41 = vunpack.i.h.bf16 %v2213_v8  ;;  %v2760_v48 = vunpack.i.h.bf16 %v2244_v28  ;;  %v2761_v25 = vunpack.i.l.bf16 %v2227_v18  ;;  %v1225_v9 = vpop.permute.xlu1 %1224 }
 0x190   : > { %v1021_v17 = vmul.f32 %v2758_v31, %v1016_v36  ;;  %v1186_v42 = vsel %vm1150_vm9, %v1132_v44, -inf  ;;  %v2762_v32 = vunpack.i.l.bf16 %v2197_v55  ;;  %v2763_v5 = vunpack.i.l.bf16 %v2213_v8 }
 0x191   : > { %v1025_v60 = vmul.f32 %v2759_v41, %v1016_v36  ;;  %v1029_v38 = vmul.f32 %v2760_v48, %v1016_v36  ;;  %v1033_v45 = vmul.f32 %v2761_v25, %v1016_v36  ;;  %v1185_v27 = vmax.f32 %v1183_v1, %v1184_v40 }
 0x192   : > { %v1037_v47 = vmul.f32 %v2762_v32, %v1016_v36  ;;  %v1041_v13 = vmul.f32 %v2763_v5, %v1016_v36  ;;  %v2764_v14 = vunpack.i.l.bf16 %v2244_v28  ;;  %v1053_v37 = vsub.f32 %v2434_v53, %v1021_v17 }
 0x193   : > { %v1057_v24 = vsub.f32 %v2451_v12, %v1025_v60  ;;  %v1061_v49 = vsub.f32 %v2475_v39, %v1029_v38  ;;  %v1187_v18 = vmax.f32 %v1185_v27, %v1186_v42  ;;  %v1188_v11 = vsel %vm1150_vm9, %v1136_v16, -inf  ;;  %v1219_v42 = vpop.permute.xlu0 %1218 }
 0x194   : > { %v1045_v26 = vmul.f32 %v2764_v14, %v1016_v36  ;;  %v1065_v62 = vsub.f32 %v2465_v34, %v1033_v45  ;;  %v1069_v55 = vsub.f32 %v2436_v30, %v1037_v47  ;;  %v1049_v2 = vmul.f32 %v1016_v36, %v2359_v63  ;;  %v914_v30 = vpop.f32.mrf.mxu3 }
 0x195   : > { %v1073_v8 = vsub.f32 %v2453_v35, %v1041_v13  ;;  %v1089_v28 = vadd.f32 %v2486_v50, %v1053_v37  ;;  %v1093_v58 = vadd.f32 %v2486_v50, %v1057_v24  ;;  %v1189_v53 = vmax.f32 %v1187_v18, %v1188_v11 }
 0x196   : > { %v1097_v12 = vadd.f32 %v2486_v50, %v1061_v49  ;;  %v1101_v39 = vadd.f32 %v2486_v50, %v1065_v62  ;;  %v1148_v56 = vmax.f32 %v1116_v20, 0.0  ;;  %v1190_v61 = vsel %vm1150_vm9, %v1140_v19, -inf  ;;  %v1222_v20 = vpop.permute.xlu2 %1221 }
 0x197   : > { %v1077_v34 = vsub.f32 %v2473_v46, %v1045_v26  ;;  %v1121_v43 = vmax.f32 %v1089_v28, 0.0  ;;  %v1191_v15 = vmax.f32 %v1189_v53, %v1190_v61  ;;  %v1105_v63 = vadd.f32 %v2486_v50, %v1069_v55  ;;  %v1216_v32 = vpop.permute.xlu1 %1215 }
 0x198   : > { %v1125_v35 = vmax.f32 %v1093_v58, 0.0  ;;  %v1129_v10 = vmax.f32 %v1097_v12, 0.0  ;;  %v1192_v22 = vsel %vm1150_vm9, %v1144_v3, -inf  ;;  %v1081_v21 = vsub.f32 %v914_v30, %v1049_v2 }
 0x199   : > { %v1109_v7 = vadd.f32 %v2486_v50, %v1073_v8  ;;  %v1193_v4 = vmax.f32 %v1191_v15, %v1192_v22  ;;  %v1133_v33 = vmax.f32 %v1101_v39, 0.0  ;;  %v1196_v54 = vsel %vm1150_vm9, %v1121_v43, -inf }
 0x19a   : > { %v1197_v57 = vsel %vm1150_vm9, %v1125_v35, -inf  ;;  %v1194_v46 = vsel %vm1150_vm9, %v1148_v56, -inf  ;;  %v1113_v59 = vadd.f32 %v2486_v50, %v1077_v34  ;;  %v1137_v0 = vmax.f32 %v1105_v63, 0.0 }
 0x19b   : > { %v1198_v6 = vmax.f32 %v1196_v54, %v1197_v57  ;;  %v1195_v51 = vmax.f32 %v1193_v4, %v1194_v46  ;;  %v1199_v36 = vsel %vm1150_vm9, %v1129_v10, -inf  ;;  %v1211_v52 = vlaneseq }
 0x19c   : > { %v1117_v29 = vadd.f32 %v2486_v50, %v1081_v21  ;;  %v1141_v16 = vmax.f32 %v1109_v7, 0.0  ;;  %v1201_v23 = vsel %vm1150_vm9, %v1133_v33, -inf  ;;  %v1145_v3 = vmax.f32 %v1113_v59, 0.0 }
 0x19d   : > { %v1200_v44 = vmax.f32 %v1198_v6, %v1199_v36  ;;  %1252 = vxpose.xlu2.b32.cont [3/4] (short) (narrow) %v1195_v51, 64  ;;  %v1212_v19 = vand.u32 127, %v1211_v52  ;;  %v1203_v40 = vsel %vm1150_vm9, %v1137_v0, -inf  ;;  %v1878_v41 = vmov 1.0  }
 0x19e   : > { %v1149_v60 = vmax.f32 %v1117_v29, 0.0  ;;  %v1205_v50 = vsel %vm1150_vm9, %v1141_v16, -inf  ;;  %v1207_v38 = vsel %vm1150_vm9, %v1145_v3, -inf }
 0x19f   : > { %v1202_v1 = vmax.f32 %v1200_v44, %v1201_v23  ;;  %v1213_v31 = vadd.s32 128, %v1212_v19  ;;  %vm1232_vm10 = vcmp.eq.s32.totalorder %v1212_v19, %v1225_v9  ;;  %vm1230_vm11 = vcmp.eq.s32.totalorder %v1212_v19, %v1222_v20 }
 0x1a0   : > { %1619 = vmatpush.msk.msrb.mxu3 %vm1232_vm10, %v1878_v41  ;;  %v1209_v45 = vsel %vm1150_vm9, %v1149_v60, -inf  ;;  %vm1228_vm14 = vcmp.eq.s32.totalorder %v1212_v19, %v1219_v42  ;;  %vm1226_vm0 = vcmp.eq.s32.totalorder %v1212_v19, %v1216_v32 }
 0x1a1   : > { %v1204_v17 = vmax.f32 %v1202_v1, %v1203_v40  ;;  %vm1233_vm12 = vcmp.eq.s32.totalorder %v1213_v31, %v1225_v9  ;;  %vm1231_vm13 = vcmp.eq.s32.totalorder %v1213_v31, %v1222_v20  ;;  %vm1229_vm15 = vcmp.eq.s32.totalorder %v1213_v31, %v1219_v42 }
 0x1a2   : > { %1631 = vmatpush.msk.msra.mxu1 %vm1233_vm12, %v1878_v41  ;;  %1620 = vmatpush.msk.msrb.mxu3 %vm1230_vm11, %v1878_v41  ;;  %vm1227_vm1 = vcmp.eq.s32.totalorder %v1213_v31, %v1216_v32 }
 0x1a3   : > { %v1206_v48 = vmax.f32 %v1204_v17, %v1205_v50 }
 0x1a4   : > { %1632 = vmatpush.msk.msra.mxu1 %vm1231_vm13, %v1878_v41  ;;  %1621 = vmatpush.msk.msrb.mxu3 %vm1228_vm14, %v1878_v41 }
 0x1a5   : > { %v1208_v25 = vmax.f32 %v1206_v48, %v1207_v38 }
 0x1a6   : > { %1633 = vmatpush.msk.msra.mxu1 %vm1229_vm15, %v1878_v41  ;;  %1622 = vmatpush.msk.msrb.mxu3 %vm1226_vm0, %v1878_v41 }
 0x1a7   : > { %v1210_v27 = vmax.f32 %v1208_v25, %v1209_v45 }
 0x1a8   : > { %1634 = vmatpush.msk.msra.mxu1 %vm1227_vm1, %v1878_v41 }
 0x1a9   : > { %1253 = vxpose.xlu2.b32.end [4/4] (short) (narrow) %v1210_v27, 64 }
 0x22a   : > { %v1266_v47 = vpop.trf.xlu2 }
 0x22b   : > { %1623 = vmatmul.msk.f32.vlgmr.msrb.gmra.mxu3 %vm1282_vm2, %v1266_v47  ;;  %1635 = vmatmul.msk.f32.vlgmr.msra.gmra.mxu1 %vm1282_vm2, %v1266_v47 }
 0x232   : > { %v1267_v5 = vpop.trf.xlu2 }
 0x233   : > { %1624 = vmatmul.msk.f32.gmra.mxu3 %vm1282_vm2, %v1267_v5  ;;  %1636 = vmatmul.msk.f32.gmra.mxu1 %vm1282_vm2, %v1267_v5 }
 0x23a   : > { %v1268_v13 = vpop.trf.xlu2 }
 0x23b   : > { %1625 = vmatmul.msk.f32.gmra.mxu3 %vm1282_vm2, %v1268_v13  ;;  %1637 = vmatmul.msk.f32.gmra.mxu1 %vm1282_vm2, %v1268_v13 }
 0x242   : > { %v1269_v14 = vpop.trf.xlu2 }
 0x243   : > { %1626 = vmatmul.msk.f32.gmra.mxu3 %vm1282_vm2, %v1269_v14  ;;  %1638 = vmatmul.msk.f32.gmra.mxu1 %vm1282_vm2, %v1269_v14 }
 0x24a   : > { %v1270_v26 = vpop.trf.xlu2 }
 0x24b   : > { %1627 = vmatmul.msk.f32.gmra.mxu3 %vm1282_vm2, %v1270_v26  ;;  %1639 = vmatmul.msk.f32.gmra.mxu1 %vm1282_vm2, %v1270_v26 }
 0x252   : > { %v1271_v37 = vpop.trf.xlu2 }
 0x253   : > { %1628 = vmatmul.msk.f32.gmra.mxu3 %vm1282_vm2, %v1271_v37  ;;  %1640 = vmatmul.msk.f32.gmra.mxu1 %vm1282_vm2, %v1271_v37 }
 0x25a   : > { %v1272_v24 = vpop.trf.xlu2 }
 0x25b   : > { %1629 = vmatmul.msk.f32.gmra.mxu3 %vm1282_vm2, %v1272_v24  ;;  %1641 = vmatmul.msk.f32.gmra.mxu1 %vm1282_vm2, %v1272_v24 }
 0x262   : > { %v1273_v49 = vpop.trf.xlu2 }
 0x263   : > { %1630 = vmatmul.msk.f32.gmra.mxu3 %vm1282_vm2, %v1273_v49  ;;  %1642 = vmatmul.msk.f32.gmra.mxu1 %vm1282_vm2, %v1273_v49 }
 0x2a8   : > { %v1365_v18 = vpop.f32.mrf.mxu1 }
 0x2a9   : > { %1390 = vst [vmem:[%s2660_s28 + $0x8] sm:$0xff] %v1365_v18 }
 0x2ae   : > { %v1324_v11 = vpop.f32.mrf.mxu3 }
 0x2af   : > { %1389 = vst [vmem:[%s2660_s28] sm:$0xff] %v1324_v11 }
 0x2b0   : > { %v1368_v62 = vpop.f32.mrf.mxu1 }
 0x2b1   : > { %1392 = vst [vmem:[%s2660_s28 + $0x18] sm:$0xff] %v1368_v62 }
 0x2b6   : > { %v1327_v55 = vpop.f32.mrf.mxu3 }
 0x2b7   : > { %1391 = vst [vmem:[%s2660_s28 + $0x10] sm:$0xff] %v1327_v55 }
 0x2b8   : > { %v1371_v2 = vpop.f32.mrf.mxu1 }
 0x2b9   : > { %1394 = vst [vmem:[%s2660_s28 + $0x28] sm:$0xff] %v1371_v2 }
 0x2be   : > { %v1330_v8 = vpop.f32.mrf.mxu3 }
 0x2bf   : > { %1393 = vst [vmem:[%s2660_s28 + $0x20] sm:$0xff] %v1330_v8 }
 0x2c0   : > { %v1374_v28 = vpop.f32.mrf.mxu1 }
 0x2c1   : > { %1396 = vst [vmem:[%s2660_s28 + $0x38] sm:$0xff] %v1374_v28 }
 0x2c6   : > { %v1333_v58 = vpop.f32.mrf.mxu3 }
 0x2c7   : > { %1395 = vst [vmem:[%s2660_s28 + $0x30] sm:$0xff] %v1333_v58 }
 0x2c8   : > { %v1377_v53 = vpop.f32.mrf.mxu1 }
 0x2c9   : > { %1398 = vst [vmem:[%s2660_s28 + $0x48] sm:$0xff] %v1377_v53 }
 0x2ce   : > { %v1336_v12 = vpop.f32.mrf.mxu3 }
 0x2cf   : > { %1397 = vst [vmem:[%s2660_s28 + $0x40] sm:$0xff] %v1336_v12 }
 0x2d0   : > { %v1380_v39 = vpop.f32.mrf.mxu1 }
 0x2d1   : > { %1400 = vst [vmem:[%s2660_s28 + $0x58] sm:$0xff] %v1380_v39 }
 0x2d6   : > { %v1339_v56 = vpop.f32.mrf.mxu3 }
 0x2d7   : > { %1399 = vst [vmem:[%s2660_s28 + $0x50] sm:$0xff] %v1339_v56 }
 0x2d8   : > { %v1383_v61 = vpop.f32.mrf.mxu1 }
 0x2d9   : > { %1402 = vst [vmem:[%s2660_s28 + $0x68] sm:$0xff] %v1383_v61 }
 0x2de   : > { %v1342_v34 = vpop.f32.mrf.mxu3 }
 0x2df   : > { %1401 = vst [vmem:[%s2660_s28 + $0x60] sm:$0xff] %v1342_v34 }
 0x2e0   : > { %v1386_v43 = vpop.f32.mrf.mxu1 }
 0x2e1   : > { %1404 = vst [vmem:[%s2660_s28 + $0x78] sm:$0xff] %v1386_v43 }
 0x2e6   : > { %v1345_v30 = vpop.f32.mrf.mxu3 }
 0x2e7   : > { %1403 = vst [vmem:[%s2660_s28 + $0x70] sm:$0xff] %v1345_v30 }
 0x2e8   : > { %1837 = shalt.err (!%p1834_p3)
}
 0x2e9   : > { %s1879_s22 = smov 256   ;;  %s1880_s23 = smov 16  }
 0x2ea   : > { %1674 = dma.vmem_to_hbm [thread:$0]  (%p1944_p5), %s1419_s7, 2048, %s1421_s8, %s1406_s9, %s1879_s22, %s1879_s22, %s1880_s23  }
 0x2eb PF: > { %p1680_p4 = scmp.ge.s32.totalorder %s1872_s18, 2  ;;  %s1435_s27 = sand.u32 1, %s1860_s15  }
 0x2ec   : > { %s1436_s28 = scalar_lea.sflag [#allocation3], %s1435_s27 }
 0x2ed   : > { %p1677_p7 = pnand %p1680_p4, %p1948_p6 }
 0x2ef   : > { %p1678_p8 = pneg %p1677_p7 }
 0x2f1   : > { %1855 = dma.done.wait (%p1678_p8), %s1436_s28, 2048  }
 0x2f2   : > { %1857 = vsyncadd (%p1678_p8), %s1436_s28, 4294965248  ;;  %p14_p9 = scmp.ge.s32.totalorder %s1931_s21, 4   ;;  %s2765_s15 = smov %s1864_s16 }
 0x2f3   : > { %s2766_s16 = smov %s1868_s17  ;;  %s2767_s17 = smov %s1942_s24 }
 0x2f4   : > { %s2768_s18 = smov %s1931_s21  ;;  %16 = sbr.rel (!%p14_p9) target bundleno = 3 (0x3), region = 74 }
 0x2f9   :  { %1442 = vsyncpa [#allocation3], 1 }
 0x2fa   :  { %1444 = vsyncpa [#allocation3 + $0x1], 1 }

</bundles_post_ra>
